<compile_context>
chip_gen: v7x
topology: tpu7x:2x2x1
jax: 0.10.0
libtpu: 0.0.40
codegen_flags: <defaults>
</compile_context>

<pallas_src>
import functools
import math

import jax
import jax.numpy as jnp
from jax.experimental import pallas as pl
from jax.experimental.pallas import tpu as pltpu


# ----------------------------- kernel helpers ------------------------------

def _layer_norm(x, w, b, eps):
    mu = jnp.mean(x, axis=-1, keepdims=True)
    xc = x - mu
    var = jnp.mean(xc * xc, axis=-1, keepdims=True)
    return xc * jax.lax.rsqrt(var + eps) * w + b


def _row_mask(tile_s, text_len):
    # True for rows that belong to the text (encoder) stream.
    row = (jax.lax.broadcasted_iota(jnp.int32, (tile_s, 1), 0)
           + pl.program_id(1) * tile_s)
    return row < text_len


# ------------------------- kernel A: adaLN projection ----------------------

def _ada_kernel(temb_ref, w_ref, b_ref, out_ref):
    t = temb_ref[...]
    t = t * jax.nn.sigmoid(t)                                   # SiLU
    out_ref[...] = (jnp.dot(t, w_ref[...],
                            preferred_element_type=jnp.float32) + b_ref[...])


# --------------------- kernel B: norm1 (adaLN) + fused QKV -----------------

def _norm1_qkv_kernel(x_ref, ada_ref, ln_w_ref, ln_b_ref, wqkv_ref,
                      q_ref, k_ref, v_ref, *, dim, text_len, tile_s, ln_eps):
    x = x_ref[0]                                                # (Ts, D) f32
    ada = ada_ref[0]                                            # (1, 12D) f32
    shift = ada[:, 0 * dim:1 * dim]
    scale = ada[:, 1 * dim:2 * dim]
    e_shift = ada[:, 3 * dim:4 * dim]
    e_scale = ada[:, 4 * dim:5 * dim]

    is_text = _row_mask(tile_s, text_len)                       # (Ts, 1)
    sh = jnp.where(is_text, e_shift, shift)                     # (Ts, D)
    sc = jnp.where(is_text, e_scale, scale)

    xn = _layer_norm(x, ln_w_ref[...], ln_b_ref[...], ln_eps) * (1.0 + sc) + sh
    qkv = jnp.dot(xn.astype(jnp.bfloat16), wqkv_ref[...],
                  preferred_element_type=jnp.float32)           # (Ts, 3D) f32
    qkv = qkv.astype(jnp.bfloat16)
    q_ref[0] = qkv[:, 0 * dim:1 * dim]
    k_ref[0] = qkv[:, 1 * dim:2 * dim]
    v_ref[0] = qkv[:, 2 * dim:3 * dim]


# ----------- kernel C: flash attention with fused per-head QK-norm ---------

def _flash_attn_kernel(q_ref, k_ref, v_ref,
                       nq_w_ref, nq_b_ref, nk_w_ref, nk_b_ref,
                       o_ref, qn_sc, m_sc, l_sc, acc_sc, *, sm_scale, qk_eps):
    ki = pl.program_id(3)

    @pl.when(ki == 0)
    def _():
        qf = q_ref[0].astype(jnp.float32)                       # (Tq, hd)
        qn = _layer_norm(qf, nq_w_ref[...], nq_b_ref[...], qk_eps)
        qn_sc[...] = qn.astype(jnp.bfloat16)
        m_sc[...] = jnp.full(m_sc.shape, -jnp.inf, jnp.float32)
        l_sc[...] = jnp.zeros(l_sc.shape, jnp.float32)
        acc_sc[...] = jnp.zeros(acc_sc.shape, jnp.float32)

    kf = k_ref[0].astype(jnp.float32)                           # (Tk, hd)
    kn = _layer_norm(kf, nk_w_ref[...], nk_b_ref[...], qk_eps).astype(jnp.bfloat16)
    v = v_ref[0]                                                # (Tk, hd) bf16

    s = jax.lax.dot_general(qn_sc[...], kn, (((1,), (1,)), ((), ())),
                            preferred_element_type=jnp.float32) * sm_scale
    m_prev = m_sc[...]
    m_new = jnp.maximum(m_prev, jnp.max(s, axis=-1, keepdims=True))
    alpha = jnp.exp(m_prev - m_new)
    p = jnp.exp(s - m_new)
    l_sc[...] = alpha * l_sc[...] + jnp.sum(p, axis=-1, keepdims=True)
    acc_sc[...] = alpha * acc_sc[...] + jax.lax.dot_general(
        p.astype(jnp.bfloat16), v, (((1,), (0,)), ((), ())),
        preferred_element_type=jnp.float32)
    m_sc[...] = m_new

    @pl.when(ki == pl.num_programs(3) - 1)
    def _():
        o_ref[0] = (acc_sc[...]
                    * pl.reciprocal(l_sc[...], approx=True)).astype(o_ref.dtype)


# ----------------- kernel D: out projection + gated residual ---------------

def _attn_out_kernel(o_ref, x_ref, ada_ref, wo_ref, bo_ref, y_ref, *,
                     dim, text_len, tile_s):
    ada = ada_ref[0]
    gate = ada[:, 2 * dim:3 * dim]
    e_gate = ada[:, 5 * dim:6 * dim]
    g = jnp.where(_row_mask(tile_s, text_len), e_gate, gate)

    proj = jnp.dot(o_ref[0], wo_ref[...],
                   preferred_element_type=jnp.float32) + bo_ref[...]
    y_ref[0] = x_ref[0] + g * proj


# -------------- kernel E: norm2 (adaLN) + FF + gated residual --------------

def _norm2_ff_kernel(y_ref, ada_ref, ln_w_ref, ln_b_ref,
                     w1_ref, b1_ref, w2_ref, b2_ref, out_ref, *,
                     dim, text_len, tile_s, ln_eps):
    y = y_ref[0]                                                # (Ts, D) f32
    ada = ada_ref[0]
    shift = ada[:, 6 * dim:7 * dim]
    scale = ada[:, 7 * dim:8 * dim]
    gate = ada[:, 8 * dim:9 * dim]
    e_shift = ada[:, 9 * dim:10 * dim]
    e_scale = ada[:, 10 * dim:11 * dim]
    e_gate = ada[:, 11 * dim:12 * dim]

    is_text = _row_mask(tile_s, text_len)
    sh = jnp.where(is_text, e_shift, shift)
    sc = jnp.where(is_text, e_scale, scale)
    g = jnp.where(is_text, e_gate, gate)

    yn = _layer_norm(y, ln_w_ref[...], ln_b_ref[...], ln_eps) * (1.0 + sc) + sh
    h1 = jnp.dot(yn.astype(jnp.bfloat16), w1_ref[...],
                 preferred_element_type=jnp.float32) + b1_ref[...]
    h1 = jax.nn.gelu(h1, approximate=True)                      # gelu-tanh
    ff = jnp.dot(h1.astype(jnp.bfloat16), w2_ref[...],
                 preferred_element_type=jnp.float32) + b2_ref[...]
    out_ref[0] = y + g * ff


# ------------------------------- wrapper -----------------------------------

def cogvideox_block(hidden_states, encoder_hidden_states, temb, params,
                    num_heads, head_dim, *, tile_s=128, tile_q=128, tile_k=128):
    f32, bf16 = jnp.float32, jnp.bfloat16
    B, Sv, D = hidden_states.shape
    St = encoder_hidden_states.shape[1]
    S = St + Sv
    assert D == num_heads * head_dim
    assert S % tile_s == 0 and S % tile_q == 0 and S % tile_k == 0

    # Text tokens first, exactly as in CogVideoXAttnProcessor2_0.
    x = jnp.concatenate([encoder_hidden_states, hidden_states], axis=1)

    # Fuse weights once in the wrapper (cast matmul weights to bf16).
    w_ada = jnp.concatenate([params['w_ada1'], params['w_ada2']], axis=1)
    b_ada = jnp.concatenate([params['b_ada1'], params['b_ada2']], axis=1)
    w_qkv = jnp.concatenate([params['wq'], params['wk'], params['wv']],
                            axis=1).astype(bf16)
    wo = params['wo'].astype(bf16)
    w_ff1 = params['w_ff1'].astype(bf16)
    w_ff2 = params['w_ff2'].astype(bf16)
    ff_inner = w_ff1.shape[1]

    # ---------------- kernel A: adaLN projection (tiny, once) --------------
    def full_spec(a):
        nd = a.ndim
        return pl.BlockSpec(a.shape, lambda i, _nd=nd: (0,) * _nd)

    ada = pl.pallas_call(
        _ada_kernel,
        grid=(1,),
        in_specs=[full_spec(temb), full_spec(w_ada), full_spec(b_ada)],
        out_specs=pl.BlockSpec((B, 12 * D), lambda i: (0, 0)),
        out_shape=jax.ShapeDtypeStruct((B, 12 * D), f32),
    )(temb, w_ada, b_ada)
    ada3 = ada.reshape(B, 1, 12 * D)

    ns = S // tile_s
    tok_spec = pl.BlockSpec((1, tile_s, D), lambda b, s: (b, s, 0))
    ada_spec = pl.BlockSpec((1, 1, 12 * D), lambda b, s: (b, 0, 0))
    vec_spec_D = pl.BlockSpec((1, D), lambda b, s: (0, 0))
    row_semantics = pltpu.CompilerParams(
        dimension_semantics=("parallel", "parallel"))

    # ---------------- kernel B: norm1 + fused QKV projection ---------------
    q, k, v = pl.pallas_call(
        functools.partial(_norm1_qkv_kernel, dim=D, text_len=St,
                          tile_s=tile_s, ln_eps=1e-5),
        grid=(B, ns),
        in_specs=[tok_spec, ada_spec, vec_spec_D, vec_spec_D,
                  pl.BlockSpec((D, 3 * D), lambda b, s: (0, 0))],
        out_specs=tuple(pl.BlockSpec((1, tile_s, D), lambda b, s: (b, s, 0))
                        for _ in range(3)),
        out_shape=tuple(jax.ShapeDtypeStruct((B, S, D), bf16) for _ in range(3)),
        compiler_params=row_semantics,
    )(x, ada3, params['ln1_w'], params['ln1_b'], w_qkv)

    # ---------------- kernel C: flash attention (+ QK layer-norm) ----------
    nq, nk = S // tile_q, S // tile_k
    q_spec = pl.BlockSpec((1, tile_q, head_dim), lambda b, h, qi, ki: (b, qi, h))
    kv_spec = pl.BlockSpec((1, tile_k, head_dim), lambda b, h, qi, ki: (b, ki, h))
    vec_spec_hd = pl.BlockSpec((1, head_dim), lambda b, h, qi, ki: (0, 0))

    attn = pl.pallas_call(
        functools.partial(_flash_attn_kernel,
                          sm_scale=1.0 / math.sqrt(head_dim), qk_eps=1e-6),
        grid=(B, num_heads, nq, nk),
        in_specs=[q_spec, kv_spec, kv_spec,
                  vec_spec_hd, vec_spec_hd, vec_spec_hd, vec_spec_hd],
        out_specs=pl.BlockSpec((1, tile_q, head_dim),
                               lambda b, h, qi, ki: (b, qi, h)),
        out_shape=jax.ShapeDtypeStruct((B, S, D), bf16),
        scratch_shapes=[
            pltpu.VMEM((tile_q, head_dim), bf16),      # cached normalized q
            pltpu.VMEM((tile_q, 1), f32),              # running max
            pltpu.VMEM((tile_q, 1), f32),              # running denom
            pltpu.VMEM((tile_q, head_dim), f32),       # accumulator
        ],
        compiler_params=pltpu.CompilerParams(
            dimension_semantics=("parallel", "parallel", "parallel", "arbitrary")),
    )(q, k, v, params['nq_w'], params['nq_b'], params['nk_w'], params['nk_b'])

    # ---------------- kernel D: out projection + gated residual ------------
    y = pl.pallas_call(
        functools.partial(_attn_out_kernel, dim=D, text_len=St, tile_s=tile_s),
        grid=(B, ns),
        in_specs=[tok_spec, tok_spec, ada_spec,
                  pl.BlockSpec((D, D), lambda b, s: (0, 0)), vec_spec_D],
        out_specs=pl.BlockSpec((1, tile_s, D), lambda b, s: (b, s, 0)),
        out_shape=jax.ShapeDtypeStruct((B, S, D), f32),
        compiler_params=row_semantics,
    )(attn, x, ada3, wo, params['bo'])

    # ---------------- kernel E: norm2 + feed-forward + residual ------------
    out = pl.pallas_call(
        functools.partial(_norm2_ff_kernel, dim=D, text_len=St,
                          tile_s=tile_s, ln_eps=1e-5),
        grid=(B, ns),
        in_specs=[tok_spec, ada_spec, vec_spec_D, vec_spec_D,
                  pl.BlockSpec((D, ff_inner), lambda b, s: (0, 0)),
                  pl.BlockSpec((1, ff_inner), lambda b, s: (0, 0)),
                  pl.BlockSpec((ff_inner, D), lambda b, s: (0, 0)),
                  vec_spec_D],
        out_specs=pl.BlockSpec((1, tile_s, D), lambda b, s: (b, s, 0)),
        out_shape=jax.ShapeDtypeStruct((B, S, D), f32),
        compiler_params=row_semantics,
    )(y, ada3, params['ln2_w'], params['ln2_b'],
      w_ff1, params['b_ff1'], w_ff2, params['b_ff2'])

    hidden_out = out[:, St:, :]
    encoder_out = out[:, :St, :]
    return hidden_out, encoder_out


# --------------------------- pure-JAX reference ----------------------------

def reference_block(hidden, encoder, temb, params, num_heads, head_dim):
    dim = num_heads * head_dim
    St = encoder.shape[1]

    def ln(x, w, b, eps):
        mu = jnp.mean(x, axis=-1, keepdims=True)
        var = jnp.mean((x - mu) ** 2, axis=-1, keepdims=True)
        return (x - mu) / jnp.sqrt(var + eps) * w + b

    t = temb * jax.nn.sigmoid(temb)

    def ada(hid, enc, w, b, ln_w, ln_b):
        a = t @ w + b
        parts = [a[:, i * dim:(i + 1) * dim] for i in range(6)]
        nh = ln(hid, ln_w, ln_b, 1e-5) * (1 + parts[1])[:, None, :] + parts[0][:, None, :]
        ne = ln(enc, ln_w, ln_b, 1e-5) * (1 + parts[4])[:, None, :] + parts[3][:, None, :]
        return nh, ne, parts[2][:, None, :], parts[5][:, None, :]

    nh, ne, gate, egate = ada(hidden, encoder, params['w_ada1'], params['b_ada1'],
                              params['ln1_w'], params['ln1_b'])
    x = jnp.concatenate([ne, nh], axis=1)
    q = x @ params['wq']
    k = x @ params['wk']
    v = x @ params['wv']
    B, S, _ = x.shape
    q = q.reshape(B, S, num_heads, head_dim).transpose(0, 2, 1, 3)
    k = k.reshape(B, S, num_heads, head_dim).transpose(0, 2, 1, 3)
    v = v.reshape(B, S, num_heads, head_dim).transpose(0, 2, 1, 3)
    q = ln(q, params['nq_w'], params['nq_b'], 1e-6)
    k = ln(k, params['nk_w'], params['nk_b'], 1e-6)
    s = jnp.einsum('bhqd,bhkd->bhqk', q, k) / math.sqrt(head_dim)
    p = jax.nn.softmax(s, axis=-1)
    o = jnp.einsum('bhqk,bhkd->bhqd', p, v).transpose(0, 2, 1, 3).reshape(B, S, dim)
    o = o @ params['wo'] + params['bo']

    hidden = hidden + gate * o[:, St:]
    encoder = encoder + egate * o[:, :St]

    nh2, ne2, gate2, egate2 = ada(hidden, encoder, params['w_ada2'], params['b_ada2'],
                                  params['ln2_w'], params['ln2_b'])
    xf = jnp.concatenate([ne2, nh2], axis=1)
    h1 = jax.nn.gelu(xf @ params['w_ff1'] + params['b_ff1'], approximate=True)
    ff = h1 @ params['w_ff2'] + params['b_ff2']

    return hidden + gate2 * ff[:, St:], encoder + egate2 * ff[:, :St]


# -------------------------- deterministic params ---------------------------

def init_params(key, dim, head_dim, time_embed_dim, ff_inner):
    ks = jax.random.split(key, 20)

    def w(k, shape, scale=0.02):
        return (scale * jax.random.normal(k, shape)).astype(jnp.float32)

    def affine_w(k, shape):
        return (1.0 + 0.05 * jax.random.normal(k, shape)).astype(jnp.float32)

    return dict(
        w_ada1=w(ks[0], (time_embed_dim, 6 * dim)), b_ada1=w(ks[1], (1, 6 * dim)),
        ln1_w=affine_w(ks[2], (1, dim)), ln1_b=w(ks[3], (1, dim)),
        wq=w(ks[4], (dim, dim)), wk=w(ks[5], (dim, dim)), wv=w(ks[6], (dim, dim)),
        nq_w=affine_w(ks[7], (1, head_dim)), nq_b=w(ks[8], (1, head_dim)),
        nk_w=affine_w(ks[9], (1, head_dim)), nk_b=w(ks[10], (1, head_dim)),
        wo=w(ks[11], (dim, dim)), bo=w(ks[12], (1, dim)),
        w_ada2=w(ks[13], (time_embed_dim, 6 * dim)), b_ada2=w(ks[14], (1, 6 * dim)),
        ln2_w=affine_w(ks[15], (1, dim)), ln2_b=w(ks[16], (1, dim)),
        w_ff1=w(ks[17], (dim, ff_inner)), b_ff1=w(ks[18], (1, ff_inner)),
        w_ff2=w(ks[19], (ff_inner, dim)), b_ff2=jnp.zeros((1, dim), jnp.float32),
    )


# ---------------------------------- main -----------------------------------

if __name__ == "__main__":
    B = 2
    text_seq = 128         # encoder_hidden_states length (tile-aligned)
    video_seq = 384        # hidden_states length
    num_heads = 2
    head_dim = 128
    dim = num_heads * head_dim
    time_embed_dim = 128
    ff_inner = 4 * dim

    key = jax.random.PRNGKey(0)
    k_h, k_e, k_t, k_p = jax.random.split(key, 4)
    hidden = jax.random.normal(k_h, (B, video_seq, dim), jnp.float32)
    encoder = jax.random.normal(k_e, (B, text_seq, dim), jnp.float32)
    temb = jax.random.normal(k_t, (B, time_embed_dim), jnp.float32)
    params = init_params(k_p, dim, head_dim, time_embed_dim, ff_inner)

    hid_out, enc_out = cogvideox_block(hidden, encoder, temb, params,
                                       num_heads, head_dim)
    hid_out = jax.block_until_ready(hid_out)
    enc_out = jax.block_until_ready(enc_out)

    ref_hid, ref_enc = reference_block(hidden, encoder, temb, params,
                                       num_heads, head_dim)
    assert hid_out.shape == (B, video_seq, dim)
    assert enc_out.shape == (B, text_seq, dim)
    assert jnp.allclose(hid_out, ref_hid, atol=2e-2, rtol=2e-2)
    assert jnp.allclose(enc_out, ref_enc, atol=2e-2, rtol=2e-2)

    print("KERNEL_OK")
</pallas_src>

<mosaic_0001>
module attributes {stable_mosaic.version = 11 : i64} {
  func.func @_ada_kernel(%arg0: i32, %arg1: memref<2x128xf32, #tpu.memory_space<vmem>>, %arg2: memref<128x3072xf32, #tpu.memory_space<vmem>>, %arg3: memref<1x3072xf32, #tpu.memory_space<vmem>>, %arg4: memref<2x3072xf32, #tpu.memory_space<vmem>>) attributes {dimension_semantics = [#tpu.dimension_semantics<arbitrary>], iteration_bounds = array<i64: 1>, scalar_prefetch = 0 : i64, scratch_operands = 0 : i64, tpu.core_type = #tpu.core_type<tc>, window_params = [{pipeline_mode = #tpu.pipeline_mode<synchronous>, transform_indices = @transform_0, window_bounds = array<i64: 2, 128>}, {pipeline_mode = #tpu.pipeline_mode<synchronous>, transform_indices = @transform_1, window_bounds = array<i64: 128, 3072>}, {pipeline_mode = #tpu.pipeline_mode<synchronous>, transform_indices = @transform_2, window_bounds = array<i64: 1, 3072>}, {pipeline_mode = #tpu.pipeline_mode<synchronous>, transform_indices = @transform_3, window_bounds = array<i64: 2, 3072>}]} {
    %c0 = arith.constant 0 : index
    %c0_0 = arith.constant 0 : index
    %0 = vector.load %arg1[%c0, %c0_0] : memref<2x128xf32, #tpu.memory_space<vmem>>, vector<2x128xf32>
    %1 = arith.negf %0 : vector<2x128xf32>
    %2 = math.exp %1 : vector<2x128xf32>
    %cst = arith.constant 1.000000e+00 : f32
    %3 = vector.broadcast %cst : f32 to vector<2x128xf32>
    %4 = arith.addf %3, %2 : vector<2x128xf32>
    %5 = arith.divf %3, %4 : vector<2x128xf32>
    %6 = arith.mulf %0, %5 : vector<2x128xf32>
    %c0_1 = arith.constant 0 : index
    %c0_2 = arith.constant 0 : index
    %7 = vector.load %arg2[%c0_1, %c0_2] : memref<128x3072xf32, #tpu.memory_space<vmem>>, vector<128x3072xf32>
    %cst_3 = arith.constant dense<0.000000e+00> : vector<2x3072xf32>
    %8 = tpu.matmul %6, %7, %cst_3 {dimension_numbers = #tpu.dot_dimension_numbers<[1], [0], [0], [1], [0, 0, 1, 1], [], []>} : vector<2x128xf32>, vector<128x3072xf32>, vector<2x3072xf32> -> vector<2x3072xf32>
    %c0_4 = arith.constant 0 : index
    %c0_5 = arith.constant 0 : index
    %9 = vector.load %arg3[%c0_4, %c0_5] : memref<1x3072xf32, #tpu.memory_space<vmem>>, vector<1x3072xf32>
    %10 = vector.broadcast %9 : vector<1x3072xf32> to vector<2x3072xf32>
    %11 = arith.addf %8, %10 : vector<2x3072xf32>
    %c0_6 = arith.constant 0 : index
    %c0_7 = arith.constant 0 : index
    %12 = vector.load %arg4[%c0_6, %c0_7] : memref<2x3072xf32, #tpu.memory_space<vmem>>, vector<2x3072xf32>
    tpu.vector_store %arg4[%c0_6, %c0_7], %11 {strides = array<i32>} : memref<2x3072xf32, #tpu.memory_space<vmem>>, vector<2x3072xf32>,
    return
  }
  func.func @transform_0(%arg0: i32) -> (i32, i32) {
    %c0_i32 = arith.constant 0 : i32
    %c0_i32_0 = arith.constant 0 : i32
    %c0_i32_1 = arith.constant 0 : i32
    return %c0_i32, %c0_i32_0 : i32, i32
  }
  func.func @transform_1(%arg0: i32) -> (i32, i32) {
    %c0_i32 = arith.constant 0 : i32
    %c0_i32_0 = arith.constant 0 : i32
    %c0_i32_1 = arith.constant 0 : i32
    return %c0_i32, %c0_i32_0 : i32, i32
  }
  func.func @transform_2(%arg0: i32) -> (i32, i32) {
    %c0_i32 = arith.constant 0 : i32
    %c0_i32_0 = arith.constant 0 : i32
    %c0_i32_1 = arith.constant 0 : i32
    return %c0_i32, %c0_i32_0 : i32, i32
  }
  func.func @transform_3(%arg0: i32) -> (i32, i32) {
    %c0_i32 = arith.constant 0 : i32
    %c0_i32_0 = arith.constant 0 : i32
    %c0_i32_1 = arith.constant 0 : i32
    return %c0_i32, %c0_i32_0 : i32, i32
  }
}

</mosaic_0001>

<bundles_post_ra>
// kernel: tpu_custom_call.1
= control target key start
LH: loop header
LB: loop body
LE: loop exit
PB: predicated region body
PF: predicated region fallthrough
CT: control target
= control target key end

     0   :  { %8 = vsyncpa [#allocation3], 0  ;;  %s2223_s0 = inlined_call_operand.hbm [shape: f32[2,128], index: 0, kind: input, shape index: {}]   ;;  %s2224_s1 = inlined_call_operand.hbm [shape: f32[128,3072], index: 1, kind: input, shape index: {}]   ;;  %s2225_s2 = inlined_call_operand.hbm [shape: f32[1,3072], index: 2, kind: input, shape index: {}]   ;;  %s2226_s3 = inlined_call_operand.hbm [shape: f32[2,3072], index: 3, kind: output, shape index: {}]  }
   0x1   :  { %9 = vsyncpa [#allocation6], 0 }
   0x2   :  { %10 = vsyncpa [#allocation4], 0  ;;  %s2067_s12 = smov [#allocation5]   ;;  %s1973_s16 = scalar_lea.hbm %s2224_s1, 49152 }
   0x3   :  { %s26_s13 = sshll.u32 %s2067_s12, 4  ;;  %p1974_p0 = scmp.ne.s32.totalorder %s2224_s1, %s1973_s16  ;;  %s27_s13 = int_to_ptr.vmem [resolvable:$true] %s26_s13 }
   0x4   :  { %p1977_p1 = scmp.lt.u32.totalorder %s1973_s16, %s2224_s1 }
   0x6   :  { %p1979_p2 = pnand %p1977_p1, %p1974_p0 }
   0x8   :  { %1982 = shalt.err (!%p1979_p2)
}
   0x9   :  { %s1983_s21 = scalar_lea.vmem %s27_s13, 49152  ;;  %p1988_p4 = scmp.lt.s32.totalorder %s27_s13, %s27_s13 }
   0xa   :  { %p1984_p3 = scmp.ne.s32.totalorder %s27_s13, %s1983_s21  ;;  %p1989_p5 = scmp.lt.s32.totalorder %s1983_s21, %s1983_s21 }
   0xc   :  { %p1990_p6 = por %p1989_p5, %p1988_p4 }
   0xe   :  { %p1991_p7 = pnand %p1990_p6, %p1984_p3 }
  0x10   :  { %1994 = shalt.err (!%p1991_p7)
}
  0x11   :  { %s2068_s22 = smov 3072   ;;  %s2069_s23 = smov 192  }
  0x12   :  { %32 = dma.hbm_to_vmem [thread:$0]  %s2224_s1, 49152, %s27_s13, [#allocation6], %s2068_s22, %s2068_s22, %s2069_s23  }
  0x13   :  { %s2070_s26 = smov [#allocation2]   ;;  %s2071_s28 = smov [#allocation7]  }
  0x14   :  { %s17_s27 = sshll.u32 %s2070_s26, 4  ;;  %s39_s29 = sshll.u32 %s2071_s28, 4  ;;  %s18_s27 = int_to_ptr.vmem [resolvable:$true] %s17_s27  ;;  %s40_s29 = int_to_ptr.vmem [resolvable:$true] %s39_s29 }
  0x15   :  { %s1995_s5 = scalar_lea.hbm %s2223_s0, 32 }
  0x16   :  { %p1996_p8 = scmp.ne.s32.totalorder %s2223_s0, %s1995_s5  ;;  %p1999_p9 = scmp.lt.u32.totalorder %s1995_s5, %s2223_s0 }
  0x18   :  { %p2001_p10 = pnand %p1999_p9, %p1996_p8 }
  0x1a   :  { %2004 = shalt.err (!%p2001_p10)
}
  0x1b   :  { %s2005_s1 = scalar_lea.vmem %s18_s27, 32  ;;  %p2010_p12 = scmp.lt.s32.totalorder %s18_s27, %s18_s27 }
  0x1c   :  { %p2006_p11 = scmp.ne.s32.totalorder %s18_s27, %s2005_s1  ;;  %p2011_p13 = scmp.lt.s32.totalorder %s2005_s1, %s2005_s1 }
  0x1e   :  { %p2012_p0 = por %p2011_p13, %p2010_p12 }
  0x20   :  { %p2013_p1 = pnand %p2012_p0, %p2006_p11 }
  0x22   :  { %2016 = shalt.err (!%p2013_p1)
}
  0x23   :  { %20 = dma.hbm_to_vmem [thread:$0]  %s2223_s0, 32, %s18_s27, [#allocation3]  }
  0x24   :  { %s2017_s14 = scalar_lea.hbm %s2225_s2, 384 }
  0x25   :  { %p2018_p2 = scmp.ne.s32.totalorder %s2225_s2, %s2017_s14  ;;  %p2021_p3 = scmp.lt.u32.totalorder %s2017_s14, %s2225_s2 }
  0x27   :  { %p2023_p4 = pnand %p2021_p3, %p2018_p2 }
  0x29   :  { %2026 = shalt.err (!%p2023_p4)
}
  0x2a   :  { %s2027_s19 = scalar_lea.vmem %s40_s29, 384  ;;  %p2032_p6 = scmp.lt.s32.totalorder %s40_s29, %s40_s29 }
  0x2b   :  { %p2028_p5 = scmp.ne.s32.totalorder %s40_s29, %s2027_s19  ;;  %p2033_p7 = scmp.lt.s32.totalorder %s2027_s19, %s2027_s19 }
  0x2d   :  { %p2034_p8 = por %p2033_p7, %p2032_p6 }
  0x2f   :  { %p2035_p9 = pnand %p2034_p8, %p2028_p5 }
  0x31   :  { %2038 = shalt.err (!%p2035_p9)
}
  0x32   :  { %42 = dma.hbm_to_vmem [thread:$0]  %s2225_s2, 384, %s40_s29, [#allocation6]  }
  0x33   :  { %2061 = dma.done.wait [#allocation3], 32  }
  0x34   :  { %2062 = vsyncadd [#allocation3], 4294967264 }
  0x35   :  { %2063 = dma.done.wait [#allocation6], 49536  }
  0x36   :  { %2064 = vsyncadd [#allocation6], 4294917760  ;;  %v2072_v0 = vmov 0.0   ;;  %v61_v1 = vld [vmem:[#allocation5 + $0x8] sm:$0xff]  ;;  %v63_v3 = vld [vmem:[#allocation5 + $0x18] sm:$0xff]  ;;  %s2074_s2 = smov [#allocation8]  }
  0x37   :  { %634 = vmatprep.mubr.f32.mxu0 %v2072_v0  ;;  %705 = vmatprep.mubr.f32.mxu1 %v2072_v0  ;;  %v85_v2 = vld [vmem:[#allocation5 + $0xc8] sm:$0xff]  ;;  %v87_v5 = vld [vmem:[#allocation5 + $0xd8] sm:$0xff]  ;;  %v60_v6 = vld [vmem:[#allocation5] sm:$0xff]  ;;  %s1566_s21 = sshll.u32 %s2074_s2, 4  ;;  %s1567_s21 = int_to_ptr.vmem [resolvable:$true] %s1566_s21 }
  0x38   :  { %v1577_v4 = vpack.c.bf16 %v85_v2, %v61_v1  ;;  %v84_v7 = vld [vmem:[#allocation5 + $0xc0] sm:$0xff]  ;;  %v1609_v8 = vpack.c.bf16 %v87_v5, %v63_v3  ;;  %v62_v10 = vld [vmem:[#allocation5 + $0x10] sm:$0xff]  ;;  %v109_v12 = vld [vmem:[#allocation5 + $0x188] sm:$0xff]  ;;  %s2039_s22 = scalar_lea.vmem %s1567_s21, 768  ;;  %p2044_p11 = scmp.lt.s32.totalorder %s1567_s21, %s1567_s21 }
  0x39   :  { %v1579_v9 = vpack.c.bf16 %v84_v7, %v60_v6  ;;  %v86_v11 = vld [vmem:[#allocation5 + $0xd0] sm:$0xff]  ;;  %v133_v14 = vld [vmem:[#allocation5 + $0x248] sm:$0xff]  ;;  %v111_v15 = vld [vmem:[#allocation5 + $0x198] sm:$0xff]  ;;  %p2040_p10 = scmp.ne.s32.totalorder %s1567_s21, %s2039_s22  ;;  %p2045_p12 = scmp.lt.s32.totalorder %s2039_s22, %s2039_s22 }
  0x3a   :  { %1578 = vmatprep.subr.bf16.mxu0 %v1577_v4  ;;  %v1611_v13 = vpack.c.bf16 %v86_v11, %v62_v10  ;;  %v135_v16 = vld [vmem:[#allocation5 + $0x258] sm:$0xff]  ;;  %1610 = vmatprep.subr.bf16.mxu1 %v1609_v8  ;;  %v1581_v17 = vpack.c.bf16 %v133_v14, %v109_v12  ;;  %v108_v19 = vld [vmem:[#allocation5 + $0x180] sm:$0xff]  ;;  %v110_v21 = vld [vmem:[#allocation5 + $0x190] sm:$0xff] }
  0x3b   :  { %1580 = vmatpush1.bf16.msra.mxu0 %v1579_v9  ;;  %v1613_v18 = vpack.c.bf16 %v135_v16, %v111_v15  ;;  %v132_v20 = vld [vmem:[#allocation5 + $0x240] sm:$0xff]  ;;  %v134_v23 = vld [vmem:[#allocation5 + $0x250] sm:$0xff]  ;;  %v157_v24 = vld [vmem:[#allocation5 + $0x308] sm:$0xff]  ;;  %p2046_p13 = por %p2045_p12, %p2044_p11 }
  0x3c   :  { %1612 = vmatpush1.bf16.msra.mxu1 %v1611_v13  ;;  %v1583_v22 = vpack.c.bf16 %v132_v20, %v108_v19  ;;  %v181_v25 = vld [vmem:[#allocation5 + $0x3c8] sm:$0xff]  ;;  %1582 = vmatprep.subr.bf16.mxu0 %v1581_v17  ;;  %v1615_v26 = vpack.c.bf16 %v134_v23, %v110_v21  ;;  %v159_v28 = vld [vmem:[#allocation5 + $0x318] sm:$0xff]  ;;  %v156_v30 = vld [vmem:[#allocation5 + $0x300] sm:$0xff] }
  0x3d   :  { %1614 = vmatprep.subr.bf16.mxu1 %v1613_v18  ;;  %v1585_v27 = vpack.c.bf16 %v181_v25, %v157_v24  ;;  %v183_v29 = vld [vmem:[#allocation5 + $0x3d8] sm:$0xff]  ;;  %v180_v32 = vld [vmem:[#allocation5 + $0x3c0] sm:$0xff]  ;;  %v158_v33 = vld [vmem:[#allocation5 + $0x310] sm:$0xff]  ;;  %p2047_p0 = pnand %p2046_p13, %p2040_p10 }
  0x3e   :  { %v1617_v31 = vpack.c.bf16 %v183_v29, %v159_v28  ;;  %v182_v34 = vld [vmem:[#allocation5 + $0x3d0] sm:$0xff]  ;;  %v1587_v35 = vpack.c.bf16 %v180_v32, %v156_v30  ;;  %v205_v36 = vld [vmem:[#allocation5 + $0x488] sm:$0xff]  ;;  %v207_v38 = vld [vmem:[#allocation5 + $0x498] sm:$0xff] }
  0x3f   :  { %1584 = vmatpush1.bf16.msra.mxu0 %v1583_v22  ;;  %v229_v37 = vld [vmem:[#allocation5 + $0x548] sm:$0xff]  ;;  %v1619_v39 = vpack.c.bf16 %v182_v34, %v158_v33  ;;  %v231_v41 = vld [vmem:[#allocation5 + $0x558] sm:$0xff]  ;;  %v204_v42 = vld [vmem:[#allocation5 + $0x480] sm:$0xff] }
  0x40   :  { %1616 = vmatpush1.bf16.msra.mxu1 %v1615_v26  ;;  %1586 = vmatprep.subr.bf16.mxu0 %v1585_v27  ;;  %v1589_v40 = vpack.c.bf16 %v229_v37, %v205_v36  ;;  %v228_v43 = vld [vmem:[#allocation5 + $0x540] sm:$0xff]  ;;  %v1621_v44 = vpack.c.bf16 %v231_v41, %v207_v38  ;;  %v206_v45 = vld [vmem:[#allocation5 + $0x490] sm:$0xff]  ;;  %v253_v47 = vld [vmem:[#allocation5 + $0x608] sm:$0xff] }
  0x41   :  { %1618 = vmatprep.subr.bf16.mxu1 %v1617_v31  ;;  %v230_v46 = vld [vmem:[#allocation5 + $0x550] sm:$0xff]  ;;  %v277_v48 = vld [vmem:[#allocation5 + $0x6c8] sm:$0xff]  ;;  %v255_v49 = vld [vmem:[#allocation5 + $0x618] sm:$0xff]  ;;  %v1591_v51 = vpack.c.bf16 %v228_v43, %v204_v42 }
  0x42   :  { %v279_v50 = vld [vmem:[#allocation5 + $0x6d8] sm:$0xff]  ;;  %v1623_v52 = vpack.c.bf16 %v230_v46, %v206_v45  ;;  %v1593_v53 = vpack.c.bf16 %v277_v48, %v253_v47  ;;  %v252_v54 = vld [vmem:[#allocation5 + $0x600] sm:$0xff]  ;;  %v254_v56 = vld [vmem:[#allocation5 + $0x610] sm:$0xff] }
  0x43   :  { %1588 = vmatpush1.bf16.msra.mxu0 %v1587_v35  ;;  %v276_v55 = vld [vmem:[#allocation5 + $0x6c0] sm:$0xff]  ;;  %v1625_v57 = vpack.c.bf16 %v279_v50, %v255_v49  ;;  %v278_v58 = vld [vmem:[#allocation5 + $0x6d0] sm:$0xff]  ;;  %v301_v59 = vld [vmem:[#allocation5 + $0x788] sm:$0xff] }
  0x44   :  { %1620 = vmatpush1.bf16.msra.mxu1 %v1619_v39  ;;  %1590 = vmatprep.subr.bf16.mxu0 %v1589_v40  ;;  %v325_v60 = vld [vmem:[#allocation5 + $0x848] sm:$0xff]  ;;  %v303_v61 = vld [vmem:[#allocation5 + $0x798] sm:$0xff]  ;;  %v1595_v63 = vpack.c.bf16 %v276_v55, %v252_v54  ;;  %v1627_v1 = vpack.c.bf16 %v278_v58, %v254_v56  ;;  %v300_v3 = vld [vmem:[#allocation5 + $0x780] sm:$0xff] }
  0x45   :  { %1622 = vmatprep.subr.bf16.mxu1 %v1621_v44  ;;  %v327_v62 = vld [vmem:[#allocation5 + $0x858] sm:$0xff]  ;;  %v1597_v2 = vpack.c.bf16 %v325_v60, %v301_v59  ;;  %v324_v4 = vld [vmem:[#allocation5 + $0x840] sm:$0xff]  ;;  %v302_v5 = vld [vmem:[#allocation5 + $0x790] sm:$0xff] }
  0x46   :  { %v1629_v6 = vpack.c.bf16 %v327_v62, %v303_v61  ;;  %v326_v7 = vld [vmem:[#allocation5 + $0x850] sm:$0xff]  ;;  %v349_v8 = vld [vmem:[#allocation5 + $0x908] sm:$0xff]  ;;  %v351_v10 = vld [vmem:[#allocation5 + $0x918] sm:$0xff]  ;;  %v1599_v12 = vpack.c.bf16 %v324_v4, %v300_v3 }
  0x47   :  { %1592 = vmatpush1.bf16.msra.mxu0 %v1591_v51  ;;  %v373_v9 = vld [vmem:[#allocation5 + $0x9c8] sm:$0xff]  ;;  %v375_v11 = vld [vmem:[#allocation5 + $0x9d8] sm:$0xff]  ;;  %v348_v13 = vld [vmem:[#allocation5 + $0x900] sm:$0xff]  ;;  %v1631_v14 = vpack.c.bf16 %v326_v7, %v302_v5 }
  0x48   :  { %1624 = vmatpush1.bf16.msra.mxu1 %v1623_v52  ;;  %1594 = vmatprep.subr.bf16.mxu0 %v1593_v53  ;;  %v1601_v15 = vpack.c.bf16 %v373_v9, %v349_v8  ;;  %v372_v16 = vld [vmem:[#allocation5 + $0x9c0] sm:$0xff]  ;;  %v350_v17 = vld [vmem:[#allocation5 + $0x910] sm:$0xff]  ;;  %v52_v18 = vld [vmem:[#allocation2] sm:$0x3]  ;;  %v1633_v19 = vpack.c.bf16 %v375_v11, %v351_v10 }
  0x49   :  { %1626 = vmatprep.subr.bf16.mxu1 %v1625_v57  ;;  %v374_v20 = vld [vmem:[#allocation5 + $0x9d0] sm:$0xff]  ;;  %v397_v21 = vld [vmem:[#allocation5 + $0xa88] sm:$0xff]  ;;  %v1576_v23 = vmul.f32 -1.442695, %v52_v18  ;;  %v399_v24 = vld [vmem:[#allocation5 + $0xa98] sm:$0xff]  ;;  %v1603_v26 = vpack.c.bf16 %v372_v16, %v348_v13 }
  0x4a   :  { %v421_v22 = vld [vmem:[#allocation5 + $0xb48] sm:$0xff]  ;;  %v423_v25 = vld [vmem:[#allocation5 + $0xb58] sm:$0xff]  ;;  %v1635_v27 = vpack.c.bf16 %v374_v20, %v350_v17  ;;  %v396_v29 = vld [vmem:[#allocation5 + $0xa80] sm:$0xff] }
  0x4b   :  { %1596 = vmatpush1.bf16.msra.mxu0 %v1595_v63  ;;  %1969 = vpow2.f32 %v1576_v23  ;;  %v1605_v28 = vpack.c.bf16 %v421_v22, %v397_v21  ;;  %v420_v30 = vld [vmem:[#allocation5 + $0xb40] sm:$0xff]  ;;  %v398_v31 = vld [vmem:[#allocation5 + $0xa90] sm:$0xff]  ;;  %v1637_v32 = vpack.c.bf16 %v423_v25, %v399_v24  ;;  %v65_v34 = vld [vmem:[#allocation5 + $0x28] sm:$0xff] }
  0x4c   :  { %1628 = vmatpush1.bf16.msra.mxu1 %v1627_v1  ;;  %1598 = vmatprep.subr.bf16.mxu0 %v1597_v2  ;;  %v422_v33 = vld [vmem:[#allocation5 + $0xb50] sm:$0xff]  ;;  %v89_v35 = vld [vmem:[#allocation5 + $0xe8] sm:$0xff]  ;;  %v67_v36 = vld [vmem:[#allocation5 + $0x38] sm:$0xff]  ;;  %v1607_v38 = vpack.c.bf16 %v420_v30, %v396_v29 }
  0x4d   :  { %1630 = vmatprep.subr.bf16.mxu1 %v1629_v6  ;;  %v91_v37 = vld [vmem:[#allocation5 + $0xf8] sm:$0xff]  ;;  %v1639_v39 = vpack.c.bf16 %v422_v33, %v398_v31  ;;  %v1641_v40 = vpack.c.bf16 %v89_v35, %v65_v34  ;;  %v64_v44 = vld [vmem:[#allocation5 + $0x20] sm:$0xff]  ;;  %v66_v46 = vld [vmem:[#allocation5 + $0x30] sm:$0xff] }
  0x4e   :  { %v1673_v41 = vpack.c.bf16 %v91_v37, %v67_v36  ;;  %v88_v45 = vld [vmem:[#allocation5 + $0xe0] sm:$0xff]  ;;  %v90_v47 = vld [vmem:[#allocation5 + $0xf0] sm:$0xff]  ;;  %v113_v48 = vld [vmem:[#allocation5 + $0x1a8] sm:$0xff] }
  0x4f   :  { %1600 = vmatpush1.bf16.msra.mxu0 %v1599_v12  ;;  %v137_v49 = vld [vmem:[#allocation5 + $0x268] sm:$0xff]  ;;  %v115_v50 = vld [vmem:[#allocation5 + $0x1b8] sm:$0xff]  ;;  %v1643_v53 = vpack.c.bf16 %v88_v45, %v64_v44  ;;  %v1675_v54 = vpack.c.bf16 %v90_v47, %v66_v46  ;;  %v112_v55 = vld [vmem:[#allocation5 + $0x1a0] sm:$0xff] }
  0x50   :  { %1632 = vmatpush1.bf16.msra.mxu1 %v1631_v14  ;;  %1602 = vmatprep.subr.bf16.mxu0 %v1601_v15  ;;  %v139_v51 = vld [vmem:[#allocation5 + $0x278] sm:$0xff]  ;;  %v136_v56 = vld [vmem:[#allocation5 + $0x260] sm:$0xff]  ;;  %v1645_v58 = vpack.c.bf16 %v137_v49, %v113_v48  ;;  %v114_v60 = vld [vmem:[#allocation5 + $0x1b0] sm:$0xff] }
  0x51   :  { %1634 = vmatprep.subr.bf16.mxu1 %v1633_v19  ;;  %v1677_v59 = vpack.c.bf16 %v139_v51, %v115_v50  ;;  %v138_v61 = vld [vmem:[#allocation5 + $0x270] sm:$0xff]  ;;  %v161_v62 = vld [vmem:[#allocation5 + $0x328] sm:$0xff]  ;;  %v163_v1 = vld [vmem:[#allocation5 + $0x338] sm:$0xff]  ;;  %v1647_v3 = vpack.c.bf16 %v136_v56, %v112_v55 }
  0x52   :  { %v185_v63 = vld [vmem:[#allocation5 + $0x3e8] sm:$0xff]  ;;  %v187_v2 = vld [vmem:[#allocation5 + $0x3f8] sm:$0xff]  ;;  %v1679_v4 = vpack.c.bf16 %v138_v61, %v114_v60  ;;  %v160_v5 = vld [vmem:[#allocation5 + $0x320] sm:$0xff] }
  0x53   :  { %1604 = vmatpush1.bf16.msra.mxu0 %v1603_v26  ;;  %v184_v6 = vld [vmem:[#allocation5 + $0x3e0] sm:$0xff]  ;;  %v1649_v7 = vpack.c.bf16 %v185_v63, %v161_v62  ;;  %v1681_v8 = vpack.c.bf16 %v187_v2, %v163_v1  ;;  %v162_v9 = vld [vmem:[#allocation5 + $0x330] sm:$0xff]  ;;  %v209_v11 = vld [vmem:[#allocation5 + $0x4a8] sm:$0xff] }
  0x54   :  { %1636 = vmatpush1.bf16.msra.mxu1 %v1635_v27  ;;  %1606 = vmatprep.subr.bf16.mxu0 %v1605_v28  ;;  %v186_v10 = vld [vmem:[#allocation5 + $0x3f0] sm:$0xff]  ;;  %v233_v12 = vld [vmem:[#allocation5 + $0x568] sm:$0xff]  ;;  %v211_v13 = vld [vmem:[#allocation5 + $0x4b8] sm:$0xff]  ;;  %v1651_v15 = vpack.c.bf16 %v184_v6, %v160_v5 }
  0x55   :  { %1638 = vmatprep.subr.bf16.mxu1 %v1637_v32  ;;  %v1970_v42 = vpop.eup %1969  ;;  %v235_v14 = vld [vmem:[#allocation5 + $0x578] sm:$0xff]  ;;  %v1683_v16 = vpack.c.bf16 %v186_v10, %v162_v9  ;;  %v208_v17 = vld [vmem:[#allocation5 + $0x4a0] sm:$0xff]  ;;  %v1653_v19 = vpack.c.bf16 %v233_v12, %v209_v11  ;;  %v210_v21 = vld [vmem:[#allocation5 + $0x4b0] sm:$0xff] }
  0x56   :  { %v56_v43 = vadd.f32 1.0, %v1970_v42  ;;  %v1685_v20 = vpack.c.bf16 %v235_v14, %v211_v13  ;;  %v234_v22 = vld [vmem:[#allocation5 + $0x570] sm:$0xff]  ;;  %v257_v23 = vld [vmem:[#allocation5 + $0x628] sm:$0xff]  ;;  %v259_v25 = vld [vmem:[#allocation5 + $0x638] sm:$0xff] }
  0x57   :  { %1608 = vmatpush1.bf16.msra.mxu0 %v1607_v38  ;;  %v281_v24 = vld [vmem:[#allocation5 + $0x6e8] sm:$0xff]  ;;  %v283_v26 = vld [vmem:[#allocation5 + $0x6f8] sm:$0xff]  ;;  %v1687_v28 = vpack.c.bf16 %v234_v22, %v210_v21  ;;  %v256_v29 = vld [vmem:[#allocation5 + $0x620] sm:$0xff] }
  0x58   :  { %1640 = vmatpush1.bf16.msra.mxu1 %v1639_v39  ;;  %1642 = vmatprep.subr.bf16.mxu0 %v1641_v40  ;;  %1971 = vrcp.f32 %v56_v43  ;;  %v280_v30 = vld [vmem:[#allocation5 + $0x6e0] sm:$0xff]  ;;  %v1657_v31 = vpack.c.bf16 %v281_v24, %v257_v23  ;;  %v1689_v32 = vpack.c.bf16 %v283_v26, %v259_v25  ;;  %v258_v33 = vld [vmem:[#allocation5 + $0x630] sm:$0xff]  ;;  %v305_v35 = vld [vmem:[#allocation5 + $0x7a8] sm:$0xff] }
  0x59   :  { %1674 = vmatprep.subr.bf16.mxu1 %v1673_v41  ;;  %v282_v34 = vld [vmem:[#allocation5 + $0x6f0] sm:$0xff]  ;;  %v329_v36 = vld [vmem:[#allocation5 + $0x868] sm:$0xff]  ;;  %v307_v37 = vld [vmem:[#allocation5 + $0x7b8] sm:$0xff]  ;;  %v1659_v39 = vpack.c.bf16 %v280_v30, %v256_v29 }
  0x5a   :  { %v331_v38 = vld [vmem:[#allocation5 + $0x878] sm:$0xff]  ;;  %v1691_v40 = vpack.c.bf16 %v282_v34, %v258_v33  ;;  %v304_v41 = vld [vmem:[#allocation5 + $0x7a0] sm:$0xff]  ;;  %v1661_v43 = vpack.c.bf16 %v329_v36, %v305_v35  ;;  %v306_v45 = vld [vmem:[#allocation5 + $0x7b0] sm:$0xff] }
  0x5b   :  { %v328_v42 = vld [vmem:[#allocation5 + $0x860] sm:$0xff]  ;;  %v1693_v44 = vpack.c.bf16 %v331_v38, %v307_v37  ;;  %v330_v46 = vld [vmem:[#allocation5 + $0x870] sm:$0xff]  ;;  %v353_v47 = vld [vmem:[#allocation5 + $0x928] sm:$0xff] }
  0x5c   :  { %v377_v48 = vld [vmem:[#allocation5 + $0x9e8] sm:$0xff]  ;;  %v355_v49 = vld [vmem:[#allocation5 + $0x938] sm:$0xff]  ;;  %v1663_v51 = vpack.c.bf16 %v328_v42, %v304_v41 }
  0x5d   :  { %v379_v50 = vld [vmem:[#allocation5 + $0x9f8] sm:$0xff]  ;;  %v1665_v55 = vpack.c.bf16 %v377_v48, %v353_v47  ;;  %v401_v60 = vld [vmem:[#allocation5 + $0xaa8] sm:$0xff] }
  0x5e   :  { %v1697_v56 = vpack.c.bf16 %v379_v50, %v355_v49  ;;  %v425_v61 = vld [vmem:[#allocation5 + $0xb68] sm:$0xff]  ;;  %v403_v62 = vld [vmem:[#allocation5 + $0xab8] sm:$0xff] }
  0x5f   :  { %v427_v63 = vld [vmem:[#allocation5 + $0xb78] sm:$0xff]  ;;  %v1669_v5 = vpack.c.bf16 %v425_v61, %v401_v60  ;;  %v69_v9 = vld [vmem:[#allocation5 + $0x48] sm:$0xff] }
  0x60   :  { %v1701_v6 = vpack.c.bf16 %v427_v63, %v403_v62  ;;  %v93_v10 = vld [vmem:[#allocation5 + $0x108] sm:$0xff]  ;;  %v71_v11 = vld [vmem:[#allocation5 + $0x58] sm:$0xff] }
  0x61   :  { %v95_v12 = vld [vmem:[#allocation5 + $0x118] sm:$0xff]  ;;  %v117_v21 = vld [vmem:[#allocation5 + $0x1c8] sm:$0xff] }
  0x62   :  { %v1972_v52 = vpop.eup %1971  ;;  %v141_v22 = vld [vmem:[#allocation5 + $0x288] sm:$0xff]  ;;  %v119_v23 = vld [vmem:[#allocation5 + $0x1d8] sm:$0xff] }
  0x63   :  { %v2133_v57 = vmul.f32 %v1972_v52, %v52_v18  ;;  %v232_v18 = vld [vmem:[#allocation5 + $0x560] sm:$0xff]  ;;  %v1695_v52 = vpack.c.bf16 %v330_v46, %v306_v45  ;;  %v143_v24 = vld [vmem:[#allocation5 + $0x298] sm:$0xff]  ;;  %v1709_v29 = vpack.c.bf16 %v141_v22, %v117_v21  ;;  %v165_v33 = vld [vmem:[#allocation5 + $0x348] sm:$0xff] }
  0x64   :  { %v1655_v27 = vpack.c.bf16 %v232_v18, %v208_v17  ;;  %v1705_v17 = vpack.c.bf16 %v93_v10, %v69_v9  ;;  %v1737_v18 = vpack.c.bf16 %v95_v12, %v71_v11  ;;  %v1741_v30 = vpack.c.bf16 %v143_v24, %v119_v23  ;;  %v189_v34 = vld [vmem:[#allocation5 + $0x408] sm:$0xff]  ;;  %v167_v35 = vld [vmem:[#allocation5 + $0x358] sm:$0xff] }
  0x65   :  { %635 = vmatmul.mubr.f32.vlgmr.msra.gmra.mrb[0].mxu0 %v2133_v57  ;;  %706 = vmatmul.mubr.f32.vlgmr.msra.gmra.mrb[0].mxu1 %v2133_v57  ;;  %v191_v36 = vld [vmem:[#allocation5 + $0x418] sm:$0xff]  ;;  %v1713_v41 = vpack.c.bf16 %v189_v34, %v165_v33  ;;  %v213_v45 = vld [vmem:[#allocation5 + $0x4c8] sm:$0xff] }
  0x66   :  { %1644 = vmatpush1.bf16.msra.mxu0 %v1643_v53  ;;  %1676 = vmatpush1.bf16.msra.mxu1 %v1675_v54  ;;  %v352_v53 = vld [vmem:[#allocation5 + $0x920] sm:$0xff]  ;;  %v1745_v42 = vpack.c.bf16 %v191_v36, %v167_v35  ;;  %v237_v46 = vld [vmem:[#allocation5 + $0x588] sm:$0xff]  ;;  %v215_v47 = vld [vmem:[#allocation5 + $0x4d8] sm:$0xff] }
  0x67   :  { %1646 = vmatprep.subr.bf16.mxu0 %v1645_v58  ;;  %1678 = vmatprep.subr.bf16.mxu1 %v1677_v59  ;;  %v376_v54 = vld [vmem:[#allocation5 + $0x9e0] sm:$0xff]  ;;  %v354_v58 = vld [vmem:[#allocation5 + $0x930] sm:$0xff]  ;;  %v239_v48 = vld [vmem:[#allocation5 + $0x598] sm:$0xff] }
  0x68   :  { %776 = vmatprep.mubr.f32.mxu0 %v2072_v0  ;;  %847 = vmatprep.mubr.f32.mxu1 %v2072_v0  ;;  %v378_v59 = vld [vmem:[#allocation5 + $0x9f0] sm:$0xff]  ;;  %v1667_v1 = vpack.c.bf16 %v376_v54, %v352_v53  ;;  %v1717_v53 = vpack.c.bf16 %v237_v46, %v213_v45  ;;  %v1749_v54 = vpack.c.bf16 %v239_v48, %v215_v47  ;;  %v263_v60 = vld [vmem:[#allocation5 + $0x658] sm:$0xff] }
  0x69   :  { %v1699_v2 = vpack.c.bf16 %v378_v59, %v354_v58  ;;  %v261_v58 = vld [vmem:[#allocation5 + $0x648] sm:$0xff]  ;;  %v287_v61 = vld [vmem:[#allocation5 + $0x718] sm:$0xff] }
  0x6a   :  { %1648 = vmatpush1.bf16.msra.mxu0 %v1647_v3  ;;  %1680 = vmatpush1.bf16.msra.mxu1 %v1679_v4  ;;  %v400_v3 = vld [vmem:[#allocation5 + $0xaa0] sm:$0xff]  ;;  %v285_v59 = vld [vmem:[#allocation5 + $0x708] sm:$0xff]  ;;  %v311_v9 = vld [vmem:[#allocation5 + $0x7d8] sm:$0xff] }
  0x6b   :  { %1650 = vmatprep.subr.bf16.mxu0 %v1649_v7  ;;  %1682 = vmatprep.subr.bf16.mxu1 %v1681_v8  ;;  %v424_v4 = vld [vmem:[#allocation5 + $0xb60] sm:$0xff]  ;;  %v402_v7 = vld [vmem:[#allocation5 + $0xab0] sm:$0xff]  ;;  %v335_v10 = vld [vmem:[#allocation5 + $0x898] sm:$0xff] }
  0x6c   :  { %v426_v8 = vld [vmem:[#allocation5 + $0xb70] sm:$0xff]  ;;  %v1671_v13 = vpack.c.bf16 %v424_v4, %v400_v3  ;;  %v1721_v3 = vpack.c.bf16 %v285_v59, %v261_v58  ;;  %v1753_v4 = vpack.c.bf16 %v287_v61, %v263_v60  ;;  %v359_v21 = vld [vmem:[#allocation5 + $0x958] sm:$0xff] }
  0x6d   :  { %v1703_v14 = vpack.c.bf16 %v426_v8, %v402_v7  ;;  %v309_v7 = vld [vmem:[#allocation5 + $0x7c8] sm:$0xff]  ;;  %v383_v22 = vld [vmem:[#allocation5 + $0xa18] sm:$0xff] }
  0x6e   :  { %1652 = vmatpush1.bf16.msra.mxu0 %v1651_v15  ;;  %1684 = vmatpush1.bf16.msra.mxu1 %v1683_v16  ;;  %v68_v15 = vld [vmem:[#allocation5 + $0x40] sm:$0xff]  ;;  %v333_v8 = vld [vmem:[#allocation5 + $0x888] sm:$0xff]  ;;  %v407_v33 = vld [vmem:[#allocation5 + $0xad8] sm:$0xff] }
  0x6f   :  { %1654 = vmatprep.subr.bf16.mxu0 %v1653_v19  ;;  %1686 = vmatprep.subr.bf16.mxu1 %v1685_v20  ;;  %v92_v16 = vld [vmem:[#allocation5 + $0x100] sm:$0xff]  ;;  %v70_v19 = vld [vmem:[#allocation5 + $0x50] sm:$0xff]  ;;  %v431_v34 = vld [vmem:[#allocation5 + $0xb98] sm:$0xff] }
  0x70   :  { %v94_v20 = vld [vmem:[#allocation5 + $0x110] sm:$0xff]  ;;  %v1707_v25 = vpack.c.bf16 %v92_v16, %v68_v15  ;;  %v1725_v15 = vpack.c.bf16 %v333_v8, %v309_v7  ;;  %v1757_v16 = vpack.c.bf16 %v335_v10, %v311_v9  ;;  %v75_v45 = vld [vmem:[#allocation5 + $0x78] sm:$0xff] }
  0x71   :  { %v1739_v26 = vpack.c.bf16 %v94_v20, %v70_v19  ;;  %v357_v19 = vld [vmem:[#allocation5 + $0x948] sm:$0xff]  ;;  %v99_v46 = vld [vmem:[#allocation5 + $0x138] sm:$0xff] }
  0x72   :  { %1656 = vmatpush1.bf16.msra.mxu0 %v1655_v27  ;;  %1688 = vmatpush1.bf16.msra.mxu1 %v1687_v28  ;;  %v116_v27 = vld [vmem:[#allocation5 + $0x1c0] sm:$0xff]  ;;  %v381_v20 = vld [vmem:[#allocation5 + $0xa08] sm:$0xff]  ;;  %v123_v58 = vld [vmem:[#allocation5 + $0x1f8] sm:$0xff] }
  0x73   :  { %1658 = vmatprep.subr.bf16.mxu0 %v1657_v31  ;;  %1690 = vmatprep.subr.bf16.mxu1 %v1689_v32  ;;  %v140_v28 = vld [vmem:[#allocation5 + $0x280] sm:$0xff]  ;;  %v118_v31 = vld [vmem:[#allocation5 + $0x1d0] sm:$0xff]  ;;  %v147_v59 = vld [vmem:[#allocation5 + $0x2b8] sm:$0xff] }
  0x74   :  { %v142_v32 = vld [vmem:[#allocation5 + $0x290] sm:$0xff]  ;;  %v1711_v37 = vpack.c.bf16 %v140_v28, %v116_v27  ;;  %v1729_v27 = vpack.c.bf16 %v381_v20, %v357_v19  ;;  %v1761_v28 = vpack.c.bf16 %v383_v22, %v359_v21  ;;  %v171_v7 = vld [vmem:[#allocation5 + $0x378] sm:$0xff] }
  0x75   :  { %v1743_v38 = vpack.c.bf16 %v142_v32, %v118_v31  ;;  %v405_v31 = vld [vmem:[#allocation5 + $0xac8] sm:$0xff]  ;;  %v195_v8 = vld [vmem:[#allocation5 + $0x438] sm:$0xff] }
  0x76   :  { %1660 = vmatpush1.bf16.msra.mxu0 %v1659_v39  ;;  %1692 = vmatpush1.bf16.msra.mxu1 %v1691_v40  ;;  %v164_v39 = vld [vmem:[#allocation5 + $0x340] sm:$0xff]  ;;  %v429_v32 = vld [vmem:[#allocation5 + $0xb88] sm:$0xff]  ;;  %v219_v19 = vld [vmem:[#allocation5 + $0x4f8] sm:$0xff] }
  0x77   :  { %1662 = vmatprep.subr.bf16.mxu0 %v1661_v43  ;;  %1694 = vmatprep.subr.bf16.mxu1 %v1693_v44  ;;  %v188_v40 = vld [vmem:[#allocation5 + $0x400] sm:$0xff]  ;;  %v166_v43 = vld [vmem:[#allocation5 + $0x350] sm:$0xff]  ;;  %v243_v20 = vld [vmem:[#allocation5 + $0x5b8] sm:$0xff] }
  0x78   :  { %v190_v44 = vld [vmem:[#allocation5 + $0x410] sm:$0xff]  ;;  %v1715_v49 = vpack.c.bf16 %v188_v40, %v164_v39  ;;  %v1733_v39 = vpack.c.bf16 %v429_v32, %v405_v31  ;;  %v1765_v40 = vpack.c.bf16 %v431_v34, %v407_v33  ;;  %v267_v31 = vld [vmem:[#allocation5 + $0x678] sm:$0xff] }
  0x79   :  { %v1747_v50 = vpack.c.bf16 %v190_v44, %v166_v43  ;;  %v73_v43 = vld [vmem:[#allocation5 + $0x68] sm:$0xff]  ;;  %v291_v32 = vld [vmem:[#allocation5 + $0x738] sm:$0xff] }
  0x7a   :  { %1664 = vmatpush1.bf16.msra.mxu0 %v1663_v51  ;;  %1696 = vmatpush1.bf16.msra.mxu1 %v1695_v52  ;;  %v212_v51 = vld [vmem:[#allocation5 + $0x4c0] sm:$0xff]  ;;  %v97_v44 = vld [vmem:[#allocation5 + $0x128] sm:$0xff] }
  0x7b   :  { %1666 = vmatprep.subr.bf16.mxu0 %v1665_v55  ;;  %1698 = vmatprep.subr.bf16.mxu1 %v1697_v56  ;;  %v236_v52 = vld [vmem:[#allocation5 + $0x580] sm:$0xff]  ;;  %v214_v55 = vld [vmem:[#allocation5 + $0x4d0] sm:$0xff] }
  0x7c   :  { %v238_v56 = vld [vmem:[#allocation5 + $0x590] sm:$0xff]  ;;  %v1719_v62 = vpack.c.bf16 %v236_v52, %v212_v51  ;;  %v1769_v51 = vpack.c.bf16 %v97_v44, %v73_v43  ;;  %v1801_v52 = vpack.c.bf16 %v99_v46, %v75_v45  ;;  %v315_v43 = vld [vmem:[#allocation5 + $0x7f8] sm:$0xff] }
  0x7d   :  { %v1751_v63 = vpack.c.bf16 %v238_v56, %v214_v55  ;;  %v121_v55 = vld [vmem:[#allocation5 + $0x1e8] sm:$0xff]  ;;  %v339_v44 = vld [vmem:[#allocation5 + $0x8b8] sm:$0xff] }
  0x7e   :  { %1668 = vmatpush1.bf16.msra.mxu0 %v1667_v1  ;;  %1700 = vmatpush1.bf16.msra.mxu1 %v1699_v2  ;;  %v260_v1 = vld [vmem:[#allocation5 + $0x640] sm:$0xff]  ;;  %v145_v56 = vld [vmem:[#allocation5 + $0x2a8] sm:$0xff] }
  0x7f   :  { %1670 = vmatprep.subr.bf16.mxu0 %v1669_v5  ;;  %1702 = vmatprep.subr.bf16.mxu1 %v1701_v6  ;;  %v284_v2 = vld [vmem:[#allocation5 + $0x700] sm:$0xff]  ;;  %v262_v5 = vld [vmem:[#allocation5 + $0x650] sm:$0xff] }
  0x80   :  { %v286_v6 = vld [vmem:[#allocation5 + $0x710] sm:$0xff]  ;;  %v1723_v11 = vpack.c.bf16 %v284_v2, %v260_v1  ;;  %v1773_v1 = vpack.c.bf16 %v145_v56, %v121_v55  ;;  %v1805_v2 = vpack.c.bf16 %v147_v59, %v123_v58  ;;  %v363_v55 = vld [vmem:[#allocation5 + $0x978] sm:$0xff] }
  0x81   :  { %v1755_v12 = vpack.c.bf16 %v286_v6, %v262_v5  ;;  %v169_v5 = vld [vmem:[#allocation5 + $0x368] sm:$0xff]  ;;  %v387_v56 = vld [vmem:[#allocation5 + $0xa38] sm:$0xff] }
  0x82   :  { %1672 = vmatpush1.bf16.msra.mxu0 %v1671_v13  ;;  %1704 = vmatpush1.bf16.msra.mxu1 %v1703_v14  ;;  %v308_v13 = vld [vmem:[#allocation5 + $0x7c0] sm:$0xff]  ;;  %v193_v6 = vld [vmem:[#allocation5 + $0x428] sm:$0xff] }
  0x83   :  { %1706 = vmatprep.subr.bf16.mxu0 %v1705_v17  ;;  %1738 = vmatprep.subr.bf16.mxu1 %v1737_v18  ;;  %v332_v14 = vld [vmem:[#allocation5 + $0x880] sm:$0xff]  ;;  %v310_v17 = vld [vmem:[#allocation5 + $0x7d0] sm:$0xff] }
  0x84   :  { %v334_v18 = vld [vmem:[#allocation5 + $0x890] sm:$0xff]  ;;  %v1727_v23 = vpack.c.bf16 %v332_v14, %v308_v13  ;;  %v1777_v13 = vpack.c.bf16 %v193_v6, %v169_v5  ;;  %v1809_v14 = vpack.c.bf16 %v195_v8, %v171_v7  ;;  %v411_v5 = vld [vmem:[#allocation5 + $0xaf8] sm:$0xff] }
  0x85   :  { %777 = vmatmul.mubr.f32.vlgmr.msra.gmra.mrb[2].mxu0 %v2133_v57  ;;  %848 = vmatmul.mubr.f32.vlgmr.msra.gmra.mrb[2].mxu1 %v2133_v57  ;;  %v1759_v24 = vpack.c.bf16 %v334_v18, %v310_v17  ;;  %v217_v17 = vld [vmem:[#allocation5 + $0x4e8] sm:$0xff]  ;;  %v435_v6 = vld [vmem:[#allocation5 + $0xbb8] sm:$0xff] }
  0x86   :  { %1708 = vmatpush1.bf16.msra.mxu0 %v1707_v25  ;;  %1740 = vmatpush1.bf16.msra.mxu1 %v1739_v26  ;;  %v356_v25 = vld [vmem:[#allocation5 + $0x940] sm:$0xff]  ;;  %v241_v18 = vld [vmem:[#allocation5 + $0x5a8] sm:$0xff] }
  0x87   :  { %1710 = vmatprep.subr.bf16.mxu0 %v1709_v29  ;;  %1742 = vmatprep.subr.bf16.mxu1 %v1741_v30  ;;  %v380_v26 = vld [vmem:[#allocation5 + $0xa00] sm:$0xff]  ;;  %v358_v29 = vld [vmem:[#allocation5 + $0x950] sm:$0xff] }
  0x88   :  { %918 = vmatprep.mubr.f32.mxu0 %v2072_v0  ;;  %989 = vmatprep.mubr.f32.mxu1 %v2072_v0  ;;  %v382_v30 = vld [vmem:[#allocation5 + $0xa10] sm:$0xff]  ;;  %v1731_v35 = vpack.c.bf16 %v380_v26, %v356_v25  ;;  %v1781_v25 = vpack.c.bf16 %v241_v18, %v217_v17  ;;  %v1813_v26 = vpack.c.bf16 %v243_v20, %v219_v19  ;;  %v79_v17 = vld [vmem:[#allocation5 + $0x98] sm:$0xff] }
  0x89   :  { %v1763_v36 = vpack.c.bf16 %v382_v30, %v358_v29  ;;  %v265_v29 = vld [vmem:[#allocation5 + $0x668] sm:$0xff]  ;;  %v103_v18 = vld [vmem:[#allocation5 + $0x158] sm:$0xff] }
  0x8a   :  { %1712 = vmatpush1.bf16.msra.mxu0 %v1711_v37  ;;  %1744 = vmatpush1.bf16.msra.mxu1 %v1743_v38  ;;  %v404_v37 = vld [vmem:[#allocation5 + $0xac0] sm:$0xff]  ;;  %v289_v30 = vld [vmem:[#allocation5 + $0x728] sm:$0xff] }
  0x8b   :  { %1714 = vmatprep.subr.bf16.mxu0 %v1713_v41  ;;  %1746 = vmatprep.subr.bf16.mxu1 %v1745_v42  ;;  %v428_v38 = vld [vmem:[#allocation5 + $0xb80] sm:$0xff]  ;;  %v406_v41 = vld [vmem:[#allocation5 + $0xad0] sm:$0xff] }
  0x8c   :  { %v430_v42 = vld [vmem:[#allocation5 + $0xb90] sm:$0xff]  ;;  %v1735_v47 = vpack.c.bf16 %v428_v38, %v404_v37  ;;  %v1785_v37 = vpack.c.bf16 %v289_v30, %v265_v29  ;;  %v1817_v38 = vpack.c.bf16 %v291_v32, %v267_v31  ;;  %v127_v29 = vld [vmem:[#allocation5 + $0x218] sm:$0xff] }
  0x8d   :  { %v1767_v48 = vpack.c.bf16 %v430_v42, %v406_v41  ;;  %v313_v41 = vld [vmem:[#allocation5 + $0x7e8] sm:$0xff]  ;;  %v151_v30 = vld [vmem:[#allocation5 + $0x2d8] sm:$0xff] }
  0x8e   :  { %1716 = vmatpush1.bf16.msra.mxu0 %v1715_v49  ;;  %1748 = vmatpush1.bf16.msra.mxu1 %v1747_v50  ;;  %v72_v49 = vld [vmem:[#allocation5 + $0x60] sm:$0xff]  ;;  %v337_v42 = vld [vmem:[#allocation5 + $0x8a8] sm:$0xff] }
  0x8f   :  { %1718 = vmatprep.subr.bf16.mxu0 %v1717_v53  ;;  %1750 = vmatprep.subr.bf16.mxu1 %v1749_v54  ;;  %v96_v50 = vld [vmem:[#allocation5 + $0x120] sm:$0xff]  ;;  %v74_v53 = vld [vmem:[#allocation5 + $0x70] sm:$0xff] }
  0x90   :  { %v98_v54 = vld [vmem:[#allocation5 + $0x130] sm:$0xff]  ;;  %v1771_v60 = vpack.c.bf16 %v96_v50, %v72_v49  ;;  %v1789_v49 = vpack.c.bf16 %v337_v42, %v313_v41  ;;  %v1821_v50 = vpack.c.bf16 %v339_v44, %v315_v43  ;;  %v175_v41 = vld [vmem:[#allocation5 + $0x398] sm:$0xff] }
  0x91   :  { %v1803_v61 = vpack.c.bf16 %v98_v54, %v74_v53  ;;  %v361_v53 = vld [vmem:[#allocation5 + $0x968] sm:$0xff]  ;;  %v199_v42 = vld [vmem:[#allocation5 + $0x458] sm:$0xff] }
  0x92   :  { %1720 = vmatpush1.bf16.msra.mxu0 %v1719_v62  ;;  %1752 = vmatpush1.bf16.msra.mxu1 %v1751_v63  ;;  %v120_v62 = vld [vmem:[#allocation5 + $0x1e0] sm:$0xff]  ;;  %v385_v54 = vld [vmem:[#allocation5 + $0xa28] sm:$0xff] }
  0x93   :  { %1722 = vmatprep.subr.bf16.mxu0 %v1721_v3  ;;  %1754 = vmatprep.subr.bf16.mxu1 %v1753_v4  ;;  %v144_v63 = vld [vmem:[#allocation5 + $0x2a0] sm:$0xff]  ;;  %v122_v3 = vld [vmem:[#allocation5 + $0x1f0] sm:$0xff] }
  0x94   :  { %v146_v4 = vld [vmem:[#allocation5 + $0x2b0] sm:$0xff]  ;;  %v1775_v9 = vpack.c.bf16 %v144_v63, %v120_v62  ;;  %v1793_v62 = vpack.c.bf16 %v385_v54, %v361_v53  ;;  %v1825_v63 = vpack.c.bf16 %v387_v56, %v363_v55  ;;  %v223_v53 = vld [vmem:[#allocation5 + $0x518] sm:$0xff] }
  0x95   :  { %v1807_v10 = vpack.c.bf16 %v146_v4, %v122_v3  ;;  %v409_v3 = vld [vmem:[#allocation5 + $0xae8] sm:$0xff]  ;;  %v247_v54 = vld [vmem:[#allocation5 + $0x5d8] sm:$0xff] }
  0x96   :  { %1724 = vmatpush1.bf16.msra.mxu0 %v1723_v11  ;;  %1756 = vmatpush1.bf16.msra.mxu1 %v1755_v12  ;;  %v168_v11 = vld [vmem:[#allocation5 + $0x360] sm:$0xff]  ;;  %v433_v4 = vld [vmem:[#allocation5 + $0xba8] sm:$0xff] }
  0x97   :  { %1726 = vmatprep.subr.bf16.mxu0 %v1725_v15  ;;  %1758 = vmatprep.subr.bf16.mxu1 %v1757_v16  ;;  %v192_v12 = vld [vmem:[#allocation5 + $0x420] sm:$0xff]  ;;  %v170_v15 = vld [vmem:[#allocation5 + $0x370] sm:$0xff] }
  0x98   :  { %v194_v16 = vld [vmem:[#allocation5 + $0x430] sm:$0xff]  ;;  %v1779_v21 = vpack.c.bf16 %v192_v12, %v168_v11  ;;  %v1797_v11 = vpack.c.bf16 %v433_v4, %v409_v3  ;;  %v1829_v12 = vpack.c.bf16 %v435_v6, %v411_v5  ;;  %v271_v3 = vld [vmem:[#allocation5 + $0x698] sm:$0xff] }
  0x99   :  { %v1811_v22 = vpack.c.bf16 %v194_v16, %v170_v15  ;;  %v77_v15 = vld [vmem:[#allocation5 + $0x88] sm:$0xff]  ;;  %v295_v4 = vld [vmem:[#allocation5 + $0x758] sm:$0xff] }
  0x9a   :  { %1728 = vmatpush1.bf16.msra.mxu0 %v1727_v23  ;;  %1760 = vmatpush1.bf16.msra.mxu1 %v1759_v24  ;;  %v216_v23 = vld [vmem:[#allocation5 + $0x4e0] sm:$0xff]  ;;  %v101_v16 = vld [vmem:[#allocation5 + $0x148] sm:$0xff] }
  0x9b   :  { %1730 = vmatprep.subr.bf16.mxu0 %v1729_v27  ;;  %1762 = vmatprep.subr.bf16.mxu1 %v1761_v28  ;;  %v240_v24 = vld [vmem:[#allocation5 + $0x5a0] sm:$0xff]  ;;  %v218_v27 = vld [vmem:[#allocation5 + $0x4f0] sm:$0xff] }
  0x9c   :  { %v242_v28 = vld [vmem:[#allocation5 + $0x5b0] sm:$0xff]  ;;  %v1783_v33 = vpack.c.bf16 %v240_v24, %v216_v23  ;;  %v1833_v23 = vpack.c.bf16 %v101_v16, %v77_v15  ;;  %v1865_v24 = vpack.c.bf16 %v103_v18, %v79_v17  ;;  %v319_v15 = vld [vmem:[#allocation5 + $0x818] sm:$0xff] }
  0x9d   :  { %v1815_v34 = vpack.c.bf16 %v242_v28, %v218_v27  ;;  %v125_v27 = vld [vmem:[#allocation5 + $0x208] sm:$0xff]  ;;  %v343_v16 = vld [vmem:[#allocation5 + $0x8d8] sm:$0xff] }
  0x9e   :  { %1732 = vmatpush1.bf16.msra.mxu0 %v1731_v35  ;;  %1764 = vmatpush1.bf16.msra.mxu1 %v1763_v36  ;;  %v264_v35 = vld [vmem:[#allocation5 + $0x660] sm:$0xff]  ;;  %v149_v28 = vld [vmem:[#allocation5 + $0x2c8] sm:$0xff] }
  0x9f   :  { %1734 = vmatprep.subr.bf16.mxu0 %v1733_v39  ;;  %1766 = vmatprep.subr.bf16.mxu1 %v1765_v40  ;;  %v288_v36 = vld [vmem:[#allocation5 + $0x720] sm:$0xff]  ;;  %v266_v39 = vld [vmem:[#allocation5 + $0x670] sm:$0xff] }
  0xa0   :  { %v290_v40 = vld [vmem:[#allocation5 + $0x730] sm:$0xff]  ;;  %v1787_v45 = vpack.c.bf16 %v288_v36, %v264_v35  ;;  %v1837_v35 = vpack.c.bf16 %v149_v28, %v125_v27  ;;  %v1869_v36 = vpack.c.bf16 %v151_v30, %v127_v29  ;;  %v367_v27 = vld [vmem:[#allocation5 + $0x998] sm:$0xff] }
  0xa1   :  { %v1819_v46 = vpack.c.bf16 %v290_v40, %v266_v39  ;;  %v173_v39 = vld [vmem:[#allocation5 + $0x388] sm:$0xff]  ;;  %v391_v28 = vld [vmem:[#allocation5 + $0xa58] sm:$0xff] }
  0xa2   :  { %1736 = vmatpush1.bf16.msra.mxu0 %v1735_v47  ;;  %1768 = vmatpush1.bf16.msra.mxu1 %v1767_v48  ;;  %v312_v47 = vld [vmem:[#allocation5 + $0x7e0] sm:$0xff]  ;;  %v197_v40 = vld [vmem:[#allocation5 + $0x448] sm:$0xff] }
  0xa3   :  { %1770 = vmatprep.subr.bf16.mxu0 %v1769_v51  ;;  %1802 = vmatprep.subr.bf16.mxu1 %v1801_v52  ;;  %v336_v48 = vld [vmem:[#allocation5 + $0x8a0] sm:$0xff]  ;;  %v314_v51 = vld [vmem:[#allocation5 + $0x7f0] sm:$0xff] }
  0xa4   :  { %v338_v52 = vld [vmem:[#allocation5 + $0x8b0] sm:$0xff]  ;;  %v1791_v58 = vpack.c.bf16 %v336_v48, %v312_v47  ;;  %v1841_v47 = vpack.c.bf16 %v197_v40, %v173_v39  ;;  %v1873_v48 = vpack.c.bf16 %v199_v42, %v175_v41  ;;  %v415_v39 = vld [vmem:[#allocation5 + $0xb18] sm:$0xff] }
  0xa5   :  { %919 = vmatmul.mubr.f32.vlgmr.msra.gmra.mrb[4].mxu0 %v2133_v57  ;;  %990 = vmatmul.mubr.f32.vlgmr.msra.gmra.mrb[4].mxu1 %v2133_v57  ;;  %v1823_v59 = vpack.c.bf16 %v338_v52, %v314_v51  ;;  %v221_v51 = vld [vmem:[#allocation5 + $0x508] sm:$0xff]  ;;  %v439_v40 = vld [vmem:[#allocation5 + $0xbd8] sm:$0xff] }
  0xa6   :  { %1772 = vmatpush1.bf16.msra.mxu0 %v1771_v60  ;;  %1804 = vmatpush1.bf16.msra.mxu1 %v1803_v61  ;;  %v360_v60 = vld [vmem:[#allocation5 + $0x960] sm:$0xff]  ;;  %v245_v52 = vld [vmem:[#allocation5 + $0x5c8] sm:$0xff] }
  0xa7   :  { %1774 = vmatprep.subr.bf16.mxu0 %v1773_v1  ;;  %1806 = vmatprep.subr.bf16.mxu1 %v1805_v2  ;;  %v384_v61 = vld [vmem:[#allocation5 + $0xa20] sm:$0xff]  ;;  %v362_v1 = vld [vmem:[#allocation5 + $0x970] sm:$0xff] }
  0xa8   :  { %1060 = vmatprep.mubr.f32.mxu0 %v2072_v0  ;;  %1131 = vmatprep.mubr.f32.mxu1 %v2072_v0  ;;  %v386_v2 = vld [vmem:[#allocation5 + $0xa30] sm:$0xff]  ;;  %v1795_v7 = vpack.c.bf16 %v384_v61, %v360_v60  ;;  %v1845_v60 = vpack.c.bf16 %v245_v52, %v221_v51  ;;  %v1877_v61 = vpack.c.bf16 %v247_v54, %v223_v53  ;;  %v83_v51 = vld [vmem:[#allocation5 + $0xb8] sm:$0xff] }
  0xa9   :  { %v1827_v8 = vpack.c.bf16 %v386_v2, %v362_v1  ;;  %v269_v1 = vld [vmem:[#allocation5 + $0x688] sm:$0xff]  ;;  %v107_v52 = vld [vmem:[#allocation5 + $0x178] sm:$0xff] }
  0xaa   :  { %1776 = vmatpush1.bf16.msra.mxu0 %v1775_v9  ;;  %1808 = vmatpush1.bf16.msra.mxu1 %v1807_v10  ;;  %v408_v9 = vld [vmem:[#allocation5 + $0xae0] sm:$0xff]  ;;  %v293_v2 = vld [vmem:[#allocation5 + $0x748] sm:$0xff] }
  0xab   :  { %1778 = vmatprep.subr.bf16.mxu0 %v1777_v13  ;;  %1810 = vmatprep.subr.bf16.mxu1 %v1809_v14  ;;  %v432_v10 = vld [vmem:[#allocation5 + $0xba0] sm:$0xff]  ;;  %v410_v13 = vld [vmem:[#allocation5 + $0xaf0] sm:$0xff] }
  0xac   :  { %v434_v14 = vld [vmem:[#allocation5 + $0xbb0] sm:$0xff]  ;;  %v1799_v19 = vpack.c.bf16 %v432_v10, %v408_v9  ;;  %v1849_v9 = vpack.c.bf16 %v293_v2, %v269_v1  ;;  %v1881_v10 = vpack.c.bf16 %v295_v4, %v271_v3  ;;  %v131_v1 = vld [vmem:[#allocation5 + $0x238] sm:$0xff] }
  0xad   :  { %v1831_v20 = vpack.c.bf16 %v434_v14, %v410_v13  ;;  %v317_v13 = vld [vmem:[#allocation5 + $0x808] sm:$0xff]  ;;  %v155_v2 = vld [vmem:[#allocation5 + $0x2f8] sm:$0xff] }
  0xae   :  { %1780 = vmatpush1.bf16.msra.mxu0 %v1779_v21  ;;  %1812 = vmatpush1.bf16.msra.mxu1 %v1811_v22  ;;  %v76_v21 = vld [vmem:[#allocation5 + $0x80] sm:$0xff]  ;;  %v341_v14 = vld [vmem:[#allocation5 + $0x8c8] sm:$0xff] }
  0xaf   :  { %1782 = vmatprep.subr.bf16.mxu0 %v1781_v25  ;;  %1814 = vmatprep.subr.bf16.mxu1 %v1813_v26  ;;  %v100_v22 = vld [vmem:[#allocation5 + $0x140] sm:$0xff]  ;;  %v78_v25 = vld [vmem:[#allocation5 + $0x90] sm:$0xff] }
  0xb0   :  { %v102_v26 = vld [vmem:[#allocation5 + $0x150] sm:$0xff]  ;;  %v1835_v31 = vpack.c.bf16 %v100_v22, %v76_v21  ;;  %v1853_v21 = vpack.c.bf16 %v341_v14, %v317_v13  ;;  %v1885_v22 = vpack.c.bf16 %v343_v16, %v319_v15  ;;  %v179_v13 = vld [vmem:[#allocation5 + $0x3b8] sm:$0xff] }
  0xb1   :  { %v1867_v32 = vpack.c.bf16 %v102_v26, %v78_v25  ;;  %v365_v25 = vld [vmem:[#allocation5 + $0x988] sm:$0xff]  ;;  %v203_v14 = vld [vmem:[#allocation5 + $0x478] sm:$0xff] }
  0xb2   :  { %1784 = vmatpush1.bf16.msra.mxu0 %v1783_v33  ;;  %1816 = vmatpush1.bf16.msra.mxu1 %v1815_v34  ;;  %v124_v33 = vld [vmem:[#allocation5 + $0x200] sm:$0xff]  ;;  %v389_v26 = vld [vmem:[#allocation5 + $0xa48] sm:$0xff] }
  0xb3   :  { %1786 = vmatprep.subr.bf16.mxu0 %v1785_v37  ;;  %1818 = vmatprep.subr.bf16.mxu1 %v1817_v38  ;;  %v148_v34 = vld [vmem:[#allocation5 + $0x2c0] sm:$0xff]  ;;  %v126_v37 = vld [vmem:[#allocation5 + $0x210] sm:$0xff] }
  0xb4   :  { %v150_v38 = vld [vmem:[#allocation5 + $0x2d0] sm:$0xff]  ;;  %v1839_v43 = vpack.c.bf16 %v148_v34, %v124_v33  ;;  %v1857_v33 = vpack.c.bf16 %v389_v26, %v365_v25  ;;  %v1889_v34 = vpack.c.bf16 %v391_v28, %v367_v27  ;;  %v227_v25 = vld [vmem:[#allocation5 + $0x538] sm:$0xff] }
  0xb5   :  { %v1871_v44 = vpack.c.bf16 %v150_v38, %v126_v37  ;;  %v413_v37 = vld [vmem:[#allocation5 + $0xb08] sm:$0xff]  ;;  %v251_v26 = vld [vmem:[#allocation5 + $0x5f8] sm:$0xff] }
  0xb6   :  { %1788 = vmatpush1.bf16.msra.mxu0 %v1787_v45  ;;  %1820 = vmatpush1.bf16.msra.mxu1 %v1819_v46  ;;  %v172_v45 = vld [vmem:[#allocation5 + $0x380] sm:$0xff]  ;;  %v437_v38 = vld [vmem:[#allocation5 + $0xbc8] sm:$0xff] }
  0xb7   :  { %1790 = vmatprep.subr.bf16.mxu0 %v1789_v49  ;;  %1822 = vmatprep.subr.bf16.mxu1 %v1821_v50  ;;  %v196_v46 = vld [vmem:[#allocation5 + $0x440] sm:$0xff]  ;;  %v174_v49 = vld [vmem:[#allocation5 + $0x390] sm:$0xff] }
  0xb8   :  { %v198_v50 = vld [vmem:[#allocation5 + $0x450] sm:$0xff]  ;;  %v1843_v55 = vpack.c.bf16 %v196_v46, %v172_v45  ;;  %v1861_v45 = vpack.c.bf16 %v437_v38, %v413_v37  ;;  %v1893_v46 = vpack.c.bf16 %v439_v40, %v415_v39  ;;  %v275_v37 = vld [vmem:[#allocation5 + $0x6b8] sm:$0xff]  ;;  %v272_v40 = vld [vmem:[#allocation5 + $0x6a0] sm:$0xff] }
  0xb9   :  { %v1875_v56 = vpack.c.bf16 %v198_v50, %v174_v49  ;;  %v81_v49 = vld [vmem:[#allocation5 + $0xa8] sm:$0xff]  ;;  %v299_v38 = vld [vmem:[#allocation5 + $0x778] sm:$0xff] }
  0xba   :  { %1792 = vmatpush1.bf16.msra.mxu0 %v1791_v58  ;;  %1824 = vmatpush1.bf16.msra.mxu1 %v1823_v59  ;;  %v220_v58 = vld [vmem:[#allocation5 + $0x500] sm:$0xff]  ;;  %v105_v50 = vld [vmem:[#allocation5 + $0x168] sm:$0xff] }
  0xbb   :  { %1794 = vmatprep.subr.bf16.mxu0 %v1793_v62  ;;  %1826 = vmatprep.subr.bf16.mxu1 %v1825_v63  ;;  %v244_v59 = vld [vmem:[#allocation5 + $0x5c0] sm:$0xff]  ;;  %v222_v62 = vld [vmem:[#allocation5 + $0x510] sm:$0xff] }
  0xbc   :  { %v246_v63 = vld [vmem:[#allocation5 + $0x5d0] sm:$0xff]  ;;  %v1847_v5 = vpack.c.bf16 %v244_v59, %v220_v58  ;;  %v1897_v58 = vpack.c.bf16 %v105_v50, %v81_v49  ;;  %v1929_v59 = vpack.c.bf16 %v107_v52, %v83_v51  ;;  %v347_v49 = vld [vmem:[#allocation5 + $0x8f8] sm:$0xff]  ;;  %v320_v52 = vld [vmem:[#allocation5 + $0x820] sm:$0xff] }
  0xbd   :  { %v1879_v6 = vpack.c.bf16 %v246_v63, %v222_v62  ;;  %v129_v62 = vld [vmem:[#allocation5 + $0x228] sm:$0xff] }
  0xbe   :  { %1796 = vmatpush1.bf16.msra.mxu0 %v1795_v7  ;;  %1828 = vmatpush1.bf16.msra.mxu1 %v1827_v8  ;;  %v268_v7 = vld [vmem:[#allocation5 + $0x680] sm:$0xff]  ;;  %v153_v63 = vld [vmem:[#allocation5 + $0x2e8] sm:$0xff] }
  0xbf   :  { %1798 = vmatprep.subr.bf16.mxu0 %v1797_v11  ;;  %1830 = vmatprep.subr.bf16.mxu1 %v1829_v12  ;;  %v292_v8 = vld [vmem:[#allocation5 + $0x740] sm:$0xff]  ;;  %v270_v11 = vld [vmem:[#allocation5 + $0x690] sm:$0xff] }
  0xc0   :  { %v294_v12 = vld [vmem:[#allocation5 + $0x750] sm:$0xff]  ;;  %v1851_v17 = vpack.c.bf16 %v292_v8, %v268_v7  ;;  %v1901_v7 = vpack.c.bf16 %v153_v63, %v129_v62  ;;  %v1933_v8 = vpack.c.bf16 %v155_v2, %v131_v1  ;;  %v395_v62 = vld [vmem:[#allocation5 + $0xa78] sm:$0xff]  ;;  %v368_v2 = vld [vmem:[#allocation5 + $0x9a0] sm:$0xff] }
  0xc1   :  { %v1883_v18 = vpack.c.bf16 %v294_v12, %v270_v11  ;;  %v177_v11 = vld [vmem:[#allocation5 + $0x3a8] sm:$0xff] }
  0xc2   :  { %1800 = vmatpush1.bf16.msra.mxu0 %v1799_v19  ;;  %1832 = vmatpush1.bf16.msra.mxu1 %v1831_v20  ;;  %v316_v19 = vld [vmem:[#allocation5 + $0x800] sm:$0xff]  ;;  %v201_v12 = vld [vmem:[#allocation5 + $0x468] sm:$0xff] }
  0xc3   :  { %1834 = vmatprep.subr.bf16.mxu0 %v1833_v23  ;;  %1866 = vmatprep.subr.bf16.mxu1 %v1865_v24  ;;  %v340_v20 = vld [vmem:[#allocation5 + $0x8c0] sm:$0xff]  ;;  %v318_v23 = vld [vmem:[#allocation5 + $0x810] sm:$0xff] }
  0xc4   :  { %v342_v24 = vld [vmem:[#allocation5 + $0x8d0] sm:$0xff]  ;;  %v1855_v29 = vpack.c.bf16 %v340_v20, %v316_v19  ;;  %v1905_v19 = vpack.c.bf16 %v201_v12, %v177_v11  ;;  %v1937_v20 = vpack.c.bf16 %v203_v14, %v179_v13  ;;  %v443_v11 = vld [vmem:[#allocation5 + $0xbf8] sm:$0xff]  ;;  %v416_v14 = vld [vmem:[#allocation5 + $0xb20] sm:$0xff] }
  0xc5   :  { %1061 = vmatmul.mubr.f32.vlgmr.msra.gmra.mrb[6].mxu0 %v2133_v57  ;;  %1132 = vmatmul.mubr.f32.vlgmr.msra.gmra.mrb[6].mxu1 %v2133_v57  ;;  %v1887_v30 = vpack.c.bf16 %v342_v24, %v318_v23  ;;  %v225_v23 = vld [vmem:[#allocation5 + $0x528] sm:$0xff] }
  0xc6   :  { %1836 = vmatpush1.bf16.msra.mxu0 %v1835_v31  ;;  %1868 = vmatpush1.bf16.msra.mxu1 %v1867_v32  ;;  %v364_v31 = vld [vmem:[#allocation5 + $0x980] sm:$0xff]  ;;  %v249_v24 = vld [vmem:[#allocation5 + $0x5e8] sm:$0xff] }
  0xc7   :  { %1838 = vmatprep.subr.bf16.mxu0 %v1837_v35  ;;  %1870 = vmatprep.subr.bf16.mxu1 %v1869_v36  ;;  %v388_v32 = vld [vmem:[#allocation5 + $0xa40] sm:$0xff]  ;;  %v366_v35 = vld [vmem:[#allocation5 + $0x990] sm:$0xff] }
  0xc8   :  { %1202 = vmatprep.mubr.f32.mxu0 %v2072_v0  ;;  %1273 = vmatprep.mubr.f32.mxu1 %v2072_v0  ;;  %v390_v36 = vld [vmem:[#allocation5 + $0xa50] sm:$0xff]  ;;  %v1859_v41 = vpack.c.bf16 %v388_v32, %v364_v31  ;;  %v1909_v31 = vpack.c.bf16 %v249_v24, %v225_v23  ;;  %v1941_v32 = vpack.c.bf16 %v251_v26, %v227_v25  ;;  %v444_v26 = vld [vmem:[#allocation7] sm:$0xff] }
  0xc9   :  { %v1891_v42 = vpack.c.bf16 %v390_v36, %v366_v35  ;;  %v273_v35 = vld [vmem:[#allocation5 + $0x6a8] sm:$0xff] }
  0xca   :  { %1840 = vmatpush1.bf16.msra.mxu0 %v1839_v43  ;;  %1872 = vmatpush1.bf16.msra.mxu1 %v1871_v44  ;;  %v412_v43 = vld [vmem:[#allocation5 + $0xb00] sm:$0xff]  ;;  %v297_v36 = vld [vmem:[#allocation5 + $0x768] sm:$0xff] }
  0xcb   :  { %1842 = vmatprep.subr.bf16.mxu0 %v1841_v47  ;;  %1874 = vmatprep.subr.bf16.mxu1 %v1873_v48  ;;  %v436_v44 = vld [vmem:[#allocation5 + $0xbc0] sm:$0xff]  ;;  %v414_v47 = vld [vmem:[#allocation5 + $0xb10] sm:$0xff] }
  0xcc   :  { %v438_v48 = vld [vmem:[#allocation5 + $0xbd0] sm:$0xff]  ;;  %v1863_v53 = vpack.c.bf16 %v436_v44, %v412_v43  ;;  %v1945_v43 = vpack.c.bf16 %v299_v38, %v275_v37 }
  0xcd   :  { %v1895_v54 = vpack.c.bf16 %v438_v48, %v414_v47  ;;  %v274_v44 = vld [vmem:[#allocation5 + $0x6b0] sm:$0xff]  ;;  %v345_v47 = vld [vmem:[#allocation5 + $0x8e8] sm:$0xff]  ;;  %v323_v48 = vld [vmem:[#allocation5 + $0x838] sm:$0xff] }
  0xce   :  { %1844 = vmatpush1.bf16.msra.mxu0 %v1843_v55  ;;  %1876 = vmatpush1.bf16.msra.mxu1 %v1875_v56  ;;  %v80_v55 = vld [vmem:[#allocation5 + $0xa0] sm:$0xff] }
  0xcf   :  { %1846 = vmatprep.subr.bf16.mxu0 %v1845_v60  ;;  %1878 = vmatprep.subr.bf16.mxu1 %v1877_v61  ;;  %v104_v56 = vld [vmem:[#allocation5 + $0x160] sm:$0xff]  ;;  %v82_v60 = vld [vmem:[#allocation5 + $0xb0] sm:$0xff] }
  0xd0   :  { %v106_v61 = vld [vmem:[#allocation5 + $0x170] sm:$0xff]  ;;  %v1899_v3 = vpack.c.bf16 %v104_v56, %v80_v55  ;;  %v1949_v55 = vpack.c.bf16 %v347_v49, %v323_v48 }
  0xd1   :  { %v1931_v4 = vpack.c.bf16 %v106_v61, %v82_v60  ;;  %v322_v56 = vld [vmem:[#allocation5 + $0x830] sm:$0xff]  ;;  %v393_v60 = vld [vmem:[#allocation5 + $0xa68] sm:$0xff]  ;;  %v371_v61 = vld [vmem:[#allocation5 + $0x9b8] sm:$0xff] }
  0xd2   :  { %1848 = vmatpush1.bf16.msra.mxu0 %v1847_v5  ;;  %1880 = vmatpush1.bf16.msra.mxu1 %v1879_v6  ;;  %v128_v5 = vld [vmem:[#allocation5 + $0x220] sm:$0xff] }
  0xd3   :  { %1850 = vmatprep.subr.bf16.mxu0 %v1849_v9  ;;  %1882 = vmatprep.subr.bf16.mxu1 %v1881_v10  ;;  %v152_v6 = vld [vmem:[#allocation5 + $0x2e0] sm:$0xff]  ;;  %v130_v9 = vld [vmem:[#allocation5 + $0x230] sm:$0xff] }
  0xd4   :  { %v154_v10 = vld [vmem:[#allocation5 + $0x2f0] sm:$0xff]  ;;  %v1903_v15 = vpack.c.bf16 %v152_v6, %v128_v5  ;;  %v1953_v5 = vpack.c.bf16 %v395_v62, %v371_v61 }
  0xd5   :  { %v1935_v16 = vpack.c.bf16 %v154_v10, %v130_v9  ;;  %v370_v6 = vld [vmem:[#allocation5 + $0x9b0] sm:$0xff]  ;;  %v441_v9 = vld [vmem:[#allocation5 + $0xbe8] sm:$0xff]  ;;  %v419_v10 = vld [vmem:[#allocation5 + $0xb38] sm:$0xff] }
  0xd6   :  { %1852 = vmatpush1.bf16.msra.mxu0 %v1851_v17  ;;  %1884 = vmatpush1.bf16.msra.mxu1 %v1883_v18  ;;  %v176_v17 = vld [vmem:[#allocation5 + $0x3a0] sm:$0xff] }
  0xd7   :  { %1854 = vmatprep.subr.bf16.mxu0 %v1853_v21  ;;  %1886 = vmatprep.subr.bf16.mxu1 %v1885_v22  ;;  %v200_v18 = vld [vmem:[#allocation5 + $0x460] sm:$0xff]  ;;  %v178_v21 = vld [vmem:[#allocation5 + $0x3b0] sm:$0xff] }
  0xd8   :  { %v202_v22 = vld [vmem:[#allocation5 + $0x470] sm:$0xff]  ;;  %v1907_v27 = vpack.c.bf16 %v200_v18, %v176_v17  ;;  %v440_v17 = vld [vmem:[#allocation5 + $0xbe0] sm:$0xff] }
  0xd9   :  { %v1939_v28 = vpack.c.bf16 %v202_v22, %v178_v21  ;;  %v418_v18 = vld [vmem:[#allocation5 + $0xb30] sm:$0xff]  ;;  %v450_v22 = vlaneseq }
  0xda   :  { %1856 = vmatpush1.bf16.msra.mxu0 %v1855_v29  ;;  %1888 = vmatpush1.bf16.msra.mxu1 %v1887_v30  ;;  %v224_v29 = vld [vmem:[#allocation5 + $0x520] sm:$0xff] }
  0xdb   :  { %1858 = vmatprep.subr.bf16.mxu0 %v1857_v33  ;;  %1890 = vmatprep.subr.bf16.mxu1 %v1889_v34  ;;  %v248_v30 = vld [vmem:[#allocation5 + $0x5e0] sm:$0xff]  ;;  %v226_v33 = vld [vmem:[#allocation5 + $0x530] sm:$0xff]  ;;  %v451_v23 = vshrl.u32 %v450_v22, 7 }
  0xdc   :  { %v250_v34 = vld [vmem:[#allocation5 + $0x5f0] sm:$0xff]  ;;  %v1911_v39 = vpack.c.bf16 %v248_v30, %v224_v29 }
  0xdd   :  { %v2157_v24 = vsub.s32 0, %v451_v23  ;;  %v2159_v25 = vsub.s32 2, %v451_v23  ;;  %v2163_v30 = vsub.s32 3, %v451_v23  ;;  %v2173_v48 = vsub.s32 4, %v451_v23 }
  0xde   :  { %1860 = vmatpush1.bf16.msra.mxu0 %v1859_v41  ;;  %1892 = vmatpush1.bf16.msra.mxu1 %v1891_v42  ;;  %v296_v41 = vld [vmem:[#allocation5 + $0x760] sm:$0xff]  ;;  %v1913_v42 = vpack.c.bf16 %v297_v36, %v273_v35  ;;  %v2175_v49 = vsub.s32 6, %v451_v23 }
  0xdf   :  { %1862 = vmatprep.subr.bf16.mxu0 %v1861_v45  ;;  %1894 = vmatprep.subr.bf16.mxu1 %v1893_v46  ;;  %v298_v45 = vld [vmem:[#allocation5 + $0x770] sm:$0xff]  ;;  %v321_v46 = vld [vmem:[#allocation5 + $0x828] sm:$0xff]  ;;  %v1915_v50 = vpack.c.bf16 %v296_v41, %v272_v40 }
  0xe0   :  { %v1947_v51 = vpack.c.bf16 %v298_v45, %v274_v44 }
  0xe2   :  { %1864 = vmatpush1.bf16.msra.mxu0 %v1863_v53  ;;  %1896 = vmatpush1.bf16.msra.mxu1 %v1895_v54  ;;  %v344_v53 = vld [vmem:[#allocation5 + $0x8e0] sm:$0xff]  ;;  %v1917_v54 = vpack.c.bf16 %v345_v47, %v321_v46 }
  0xe3   :  { %1898 = vmatprep.subr.bf16.mxu0 %v1897_v58  ;;  %1930 = vmatprep.subr.bf16.mxu1 %v1929_v59  ;;  %v346_v58 = vld [vmem:[#allocation5 + $0x8f0] sm:$0xff]  ;;  %v369_v59 = vld [vmem:[#allocation5 + $0x9a8] sm:$0xff]  ;;  %v1919_v63 = vpack.c.bf16 %v344_v53, %v320_v52  ;;  %v469_v52 = vrot.slane %v444_v26, %v2173_v48  ;;  %v477_v53 = vrot.slane %v444_v26, %v2175_v49 }
  0xe4   :  { %v1951_v1 = vpack.c.bf16 %v346_v58, %v322_v56 }
  0xe5   :  { %1203 = vmatmul.mubr.f32.vlgmr.msra.gmra.mrb[8].mxu0 %v2133_v57  ;;  %1274 = vmatmul.mubr.f32.vlgmr.msra.gmra.mrb[8].mxu1 %v2133_v57 }
  0xe6   :  { %1900 = vmatpush1.bf16.msra.mxu0 %v1899_v3  ;;  %1932 = vmatpush1.bf16.msra.mxu1 %v1931_v4  ;;  %v392_v3 = vld [vmem:[#allocation5 + $0xa60] sm:$0xff]  ;;  %v1921_v4 = vpack.c.bf16 %v393_v60, %v369_v59 }
  0xe7   :  { %1902 = vmatprep.subr.bf16.mxu0 %v1901_v7  ;;  %1934 = vmatprep.subr.bf16.mxu1 %v1933_v8  ;;  %v394_v7 = vld [vmem:[#allocation5 + $0xa70] sm:$0xff]  ;;  %v417_v8 = vld [vmem:[#allocation5 + $0xb28] sm:$0xff]  ;;  %v1923_v12 = vpack.c.bf16 %v392_v3, %v368_v2 }
  0xe8   :  { %1344 = vmatprep.mubr.f32.mxu0 %v2072_v0  ;;  %1415 = vmatprep.mubr.f32.mxu1 %v2072_v0  ;;  %v1943_v0 = vpack.c.bf16 %v250_v34, %v226_v33  ;;  %v1955_v13 = vpack.c.bf16 %v394_v7, %v370_v6  ;;  %v465_v34 = vrot.slane %v444_v26, %v2163_v30  ;;  %v445_v7 = vld [vmem:[#allocation7 + $0x8] sm:$0xff] }
  0xea   :  { %1904 = vmatpush1.bf16.msra.mxu0 %v1903_v15  ;;  %1936 = vmatpush1.bf16.msra.mxu1 %v1935_v16  ;;  %v1925_v15 = vpack.c.bf16 %v441_v9, %v417_v8  ;;  %v1957_v16 = vpack.c.bf16 %v443_v11, %v419_v10  ;;  %v485_v8 = vrot.slane %v445_v7, %v2157_v24 }
  0xeb   :  { %1906 = vmatprep.subr.bf16.mxu0 %v1905_v19  ;;  %1938 = vmatprep.subr.bf16.mxu1 %v1937_v20  ;;  %v442_v19 = vld [vmem:[#allocation5 + $0xbf0] sm:$0xff]  ;;  %v1927_v20 = vpack.c.bf16 %v440_v17, %v416_v14  ;;  %v493_v9 = vrot.slane %v445_v7, %v2159_v25  ;;  %v497_v11 = vrot.slane %v445_v7, %v2163_v30 }
  0xec   :  { %v1959_v21 = vpack.c.bf16 %v442_v19, %v418_v18 }
  0xee   :  { %1908 = vmatpush1.bf16.msra.mxu0 %v1907_v27  ;;  %1940 = vmatpush1.bf16.msra.mxu1 %v1939_v28  ;;  %v2161_v27 = vsub.s32 1, %v451_v23  ;;  %v2073_v28 = vmov 1983009808  }
  0xef   :  { %1910 = vmatprep.subr.bf16.mxu0 %v1909_v31  ;;  %1942 = vmatprep.subr.bf16.mxu1 %v1941_v32  ;;  %v1449_v29 = vunpack.c.l.s4 %v2073_v28  ;;  %v453_v31 = vrot.slane %v444_v26, %v2157_v24  ;;  %v461_v32 = vrot.slane %v444_v26, %v2159_v25  ;;  %v501_v28 = vrot.slane %v445_v7, %v2173_v48 }
  0xf0   :  { %v457_v33 = vrot.slane %v444_v26, %v2161_v27  ;;  %v489_v10 = vrot.slane %v445_v7, %v2161_v27 }
  0xf2   :  { %1912 = vmatpush1.bf16.msra.mxu0 %v1911_v39  ;;  %1944 = vmatpush1.bf16.msra.mxu1 %v1943_v0 }
  0xf3   :  { %1914 = vmatprep.subr.bf16.mxu0 %v1913_v42  ;;  %1946 = vmatprep.subr.bf16.mxu1 %v1945_v43 }
  0xf6   :  { %1916 = vmatpush1.bf16.msra.mxu0 %v1915_v50  ;;  %1948 = vmatpush1.bf16.msra.mxu1 %v1947_v51  ;;  %v2177_v50 = vsub.s32 5, %v451_v23  ;;  %v2179_v51 = vsub.s32 7, %v451_v23 }
  0xf7   :  { %1918 = vmatprep.subr.bf16.mxu0 %v1917_v54  ;;  %1950 = vmatprep.subr.bf16.mxu1 %v1949_v55 }
  0xf8   :  { %v473_v54 = vrot.slane %v444_v26, %v2177_v50  ;;  %v481_v55 = vrot.slane %v444_v26, %v2179_v51 }
  0xfa   :  { %1920 = vmatpush1.bf16.msra.mxu0 %v1919_v63  ;;  %1952 = vmatpush1.bf16.msra.mxu1 %v1951_v1 }
  0xfb   :  { %1922 = vmatprep.subr.bf16.mxu0 %v1921_v4  ;;  %1954 = vmatprep.subr.bf16.mxu1 %v1953_v5 }
  0xfe   :  { %1924 = vmatpush1.bf16.msra.mxu0 %v1923_v12  ;;  %1956 = vmatpush1.bf16.msra.mxu1 %v1955_v13 }
  0xff   :  { %1926 = vmatprep.subr.bf16.mxu0 %v1925_v15  ;;  %1958 = vmatprep.subr.bf16.mxu1 %v1957_v16 }
 0x102   :  { %1928 = vmatpush1.bf16.msra.mxu0 %v1927_v20  ;;  %1960 = vmatpush1.bf16.msra.mxu1 %v1959_v21 }
 0x105   :  { %1345 = vmatmul.mubr.f32.vlgmr.msra.gmra.mrb[10].mxu0 %v2133_v57  ;;  %1416 = vmatmul.mubr.f32.vlgmr.msra.gmra.mrb[10].mxu1 %v2133_v57  ;;  %v1450_v57 = vunpack.c.0.s8 %v1449_v29  ;;  %v509_v29 = vrot.slane %v445_v7, %v2175_v49 }
 0x107   :  { %v2169_v41 = vsub.s32 %v1450_v57, %v451_v23 }
 0x138   :  { %v636_v35 = vpop.f32.mrb[0].mxu0  ;;  %v707_v36 = vpop.f32.mrb[0].mxu1 }
 0x139   :  { %v637_v37 = vadd.f32 %v636_v35, %v453_v31  ;;  %v708_v38 = vadd.f32 %v707_v36, %v461_v32  ;;  %v638_v39 = vpop.f32.mrb[1].mxu0  ;;  %v709_v0 = vpop.f32.mrb[1].mxu1  ;;  %v505_v31 = vrot.slane %v445_v7, %v2177_v50  ;;  %v513_v32 = vrot.slane %v445_v7, %v2179_v51 }
 0x13a   :  { %v639_v40 = vadd.f32 %v638_v39, %v457_v33  ;;  %v710_v42 = vadd.f32 %v709_v0, %v465_v34 }
 0x13c   :  { %v1446_v43 = vcombine.low %v637_v37, %v639_v40  ;;  %v1447_v44 = vcombine.low %v708_v38, %v710_v42 }
 0x13e   :  { %v1454_v45 = vrot.slane %v1446_v43, %v2169_v41  ;;  %v1461_v46 = vrot.slane %v1447_v44, %v2169_v41 }
 0x140   :  { %v1462_v47 = vcombine.low %v1454_v45, %v1461_v46  ;;  %v446_v45 = vld [vmem:[#allocation7 + $0x10] sm:$0xff] }
 0x141   :  { %v517_v46 = vrot.slane %v446_v45, %v2157_v24 }
 0x142   :  { %1554 = vst [vmem:[#allocation8] sm:$0xff] %v1462_v47  ;;  %v525_v47 = vrot.slane %v446_v45, %v2159_v25  ;;  %v533_v25 = vrot.slane %v446_v45, %v2173_v48 }
 0x158   :  { %v778_v56 = vpop.f32.mrb[2].mxu0  ;;  %v849_v58 = vpop.f32.mrb[2].mxu1 }
 0x159   :  { %v779_v59 = vadd.f32 %v778_v56, %v469_v52  ;;  %v850_v60 = vadd.f32 %v849_v58, %v477_v53  ;;  %v780_v61 = vpop.f32.mrb[3].mxu0  ;;  %v851_v62 = vpop.f32.mrb[3].mxu1  ;;  %v521_v52 = vrot.slane %v446_v45, %v2161_v27  ;;  %v529_v53 = vrot.slane %v446_v45, %v2163_v30 }
 0x15a   :  { %v781_v63 = vadd.f32 %v780_v61, %v473_v54  ;;  %v852_v1 = vadd.f32 %v851_v62, %v481_v55  ;;  %v541_v27 = vrot.slane %v446_v45, %v2175_v49  ;;  %v537_v30 = vrot.slane %v446_v45, %v2177_v50 }
 0x15c   :  { %v1463_v2 = vcombine.low %v779_v59, %v781_v63  ;;  %v1464_v3 = vcombine.low %v850_v60, %v852_v1 }
 0x15e   :  { %v1471_v4 = vrot.slane %v1463_v2, %v2169_v41  ;;  %v1478_v5 = vrot.slane %v1464_v3, %v2169_v41 }
 0x160   :  { %v1479_v6 = vcombine.low %v1471_v4, %v1478_v5  ;;  %v545_v4 = vrot.slane %v446_v45, %v2179_v51 }
 0x162   :  { %1555 = vst [vmem:[#allocation8 + $0x8] sm:$0xff] %v1479_v6 }
 0x178   :  { %v920_v12 = vpop.f32.mrb[4].mxu0  ;;  %v991_v13 = vpop.f32.mrb[4].mxu1 }
 0x179   :  { %v921_v14 = vadd.f32 %v920_v12, %v485_v8  ;;  %v992_v15 = vadd.f32 %v991_v13, %v493_v9  ;;  %v922_v16 = vpop.f32.mrb[5].mxu0  ;;  %v993_v17 = vpop.f32.mrb[5].mxu1 }
 0x17a   :  { %v923_v18 = vadd.f32 %v922_v16, %v489_v10  ;;  %v994_v19 = vadd.f32 %v993_v17, %v497_v11 }
 0x17c   :  { %v1480_v20 = vcombine.low %v921_v14, %v923_v18  ;;  %v1481_v21 = vcombine.low %v992_v15, %v994_v19 }
 0x17e   :  { %v1488_v22 = vrot.slane %v1480_v20, %v2169_v41  ;;  %v1495_v23 = vrot.slane %v1481_v21, %v2169_v41 }
 0x180   :  { %v1496_v26 = vcombine.low %v1488_v22, %v1495_v23 }
 0x182   :  { %1556 = vst [vmem:[#allocation8 + $0x10] sm:$0xff] %v1496_v26 }
 0x198   :  { %v1062_v33 = vpop.f32.mrb[6].mxu0  ;;  %v1133_v57 = vpop.f32.mrb[6].mxu1 }
 0x199   :  { %v1063_v34 = vadd.f32 %v1062_v33, %v501_v28  ;;  %v1134_v35 = vadd.f32 %v1133_v57, %v509_v29  ;;  %v1064_v36 = vpop.f32.mrb[7].mxu0  ;;  %v1135_v37 = vpop.f32.mrb[7].mxu1 }
 0x19a   :  { %v1065_v38 = vadd.f32 %v1064_v36, %v505_v31  ;;  %v1136_v39 = vadd.f32 %v1135_v37, %v513_v32 }
 0x19c   :  { %v1497_v0 = vcombine.low %v1063_v34, %v1065_v38  ;;  %v1498_v40 = vcombine.low %v1134_v35, %v1136_v39 }
 0x19e   :  { %v1505_v42 = vrot.slane %v1497_v0, %v2169_v41  ;;  %v1512_v43 = vrot.slane %v1498_v40, %v2169_v41 }
 0x1a0   :  { %v1513_v44 = vcombine.low %v1505_v42, %v1512_v43 }
 0x1a2   :  { %1557 = vst [vmem:[#allocation8 + $0x18] sm:$0xff] %v1513_v44 }
 0x1b8   :  { %v1204_v54 = vpop.f32.mrb[8].mxu0  ;;  %v1275_v55 = vpop.f32.mrb[8].mxu1 }
 0x1b9   :  { %v1205_v56 = vadd.f32 %v1204_v54, %v517_v46  ;;  %v1276_v58 = vadd.f32 %v1275_v55, %v525_v47  ;;  %v1206_v59 = vpop.f32.mrb[9].mxu0  ;;  %v1277_v60 = vpop.f32.mrb[9].mxu1 }
 0x1ba   :  { %v1207_v61 = vadd.f32 %v1206_v59, %v521_v52  ;;  %v1278_v62 = vadd.f32 %v1277_v60, %v529_v53 }
 0x1bc   :  { %v1514_v63 = vcombine.low %v1205_v56, %v1207_v61  ;;  %v1515_v1 = vcombine.low %v1276_v58, %v1278_v62 }
 0x1be   :  { %v1522_v2 = vrot.slane %v1514_v63, %v2169_v41  ;;  %v1529_v24 = vrot.slane %v1515_v1, %v2169_v41 }
 0x1c0   :  { %v1530_v3 = vcombine.low %v1522_v2, %v1529_v24 }
 0x1c2   :  { %1558 = vst [vmem:[#allocation8 + $0x20] sm:$0xff] %v1530_v3 }
 0x1d8   :  { %v1346_v5 = vpop.f32.mrb[10].mxu0  ;;  %v1417_v6 = vpop.f32.mrb[10].mxu1 }
 0x1d9   :  { %v1347_v7 = vadd.f32 %v1346_v5, %v533_v25  ;;  %v1418_v8 = vadd.f32 %v1417_v6, %v541_v27  ;;  %v1348_v9 = vpop.f32.mrb[11].mxu0  ;;  %v1419_v10 = vpop.f32.mrb[11].mxu1 }
 0x1da   :  { %v1349_v11 = vadd.f32 %v1348_v9, %v537_v30  ;;  %v1420_v12 = vadd.f32 %v1419_v10, %v545_v4 }
 0x1dc   :  { %v1531_v13 = vcombine.low %v1347_v7, %v1349_v11  ;;  %v1532_v14 = vcombine.low %v1418_v8, %v1420_v12 }
 0x1de   :  { %v1539_v48 = vrot.slane %v1531_v13, %v2169_v41  ;;  %v1546_v49 = vrot.slane %v1532_v14, %v2169_v41 }
 0x1e0   :  { %v1547_v15 = vcombine.low %v1539_v48, %v1546_v49 }
 0x1e2   :  { %1559 = vst [vmem:[#allocation8 + $0x28] sm:$0xff] %v1547_v15 }
 0x1e3   :  { %2050 = shalt.err (!%p2047_p0)
}
 0x1e4   :  { %s2051_s25 = scalar_lea.hbm %s2226_s3, 768 }
 0x1e5   :  { %p2052_p1 = scmp.ne.s32.totalorder %s2226_s3, %s2051_s25  ;;  %p2055_p2 = scmp.lt.u32.totalorder %s2051_s25, %s2226_s3 }
 0x1e7   :  { %p2057_p3 = pnand %p2055_p2, %p2052_p1 }
 0x1e9   :  { %2060 = shalt.err (!%p2057_p3)
}
 0x1ea   :  { %1569 = dma.vmem_to_hbm [thread:$0]  %s1567_s21, 768, %s2226_s3, [#allocation4]  }
 0x1eb   :  { %2065 = dma.done.wait [#allocation4], 768  }
 0x1ec   :  { %2066 = vsyncadd [#allocation4], 4294966528 }
 0x1ed   :  { %1573 = vsyncpa [#allocation3], 1 }
 0x1ee   :  { %1574 = vsyncpa [#allocation6], 1 }
 0x1ef   :  { %1575 = vsyncpa [#allocation4], 1 }

</bundles_post_ra>
